<compile_context>
chip_gen: v6e
topology: v6e:2x2x1
jax: 0.10.0
libtpu: 0.0.40
codegen_flags: <defaults>
</compile_context>

<pallas_src>
import functools

import jax
import jax.numpy as jnp
from jax.experimental import pallas as pl
from jax.experimental.pallas import tpu as pltpu


# ----------------------------------------------------------------------------
# Per-generation VMEM budget
# ----------------------------------------------------------------------------

@functools.lru_cache(maxsize=None)
def _vmem_budget_bytes():
    cap = None
    try:
        cap = int(pltpu.get_tpu_info().vmem_capacity_bytes)
    except Exception:
        cap = None
    if cap is None:
        # Unknown generation: stay conservative (safe on v7x's 64 MiB).
        return 44 * 1024 * 1024
    if cap >= 100 * 1024 * 1024:        # v5e / v6e: 128 MiB physical
        return 96 * 1024 * 1024
    # v7x: 64 MiB physical -> leave headroom for internal scratch / pipelining
    return max(32 * 1024 * 1024, min(44 * 1024 * 1024, cap - 20 * 1024 * 1024))


def _pick_tile(dim, candidates):
    """Largest candidate that divides `dim`; falls back to the full dim."""
    for c in candidates:
        if dim >= c and dim % c == 0:
            return c
    return dim


# ----------------------------------------------------------------------------
# Tiled linear (bf16 MXU matmul, f32 accumulator, fused bias + activation)
# ----------------------------------------------------------------------------

def _linear_kernel(x_ref, w_ref, b_ref, o_ref, acc_ref, *, activation):
    @pl.when(pl.program_id(2) == 0)
    def _():
        acc_ref[...] = jnp.zeros_like(acc_ref)

    # bf16 x bf16 -> f32 accumulation: native MXU throughput, no f32 upcast.
    acc_ref[...] += jnp.dot(x_ref[...], w_ref[...],
                            preferred_element_type=jnp.float32)

    @pl.when(pl.program_id(2) == pl.num_programs(2) - 1)
    def _():
        y = acc_ref[...] + b_ref[...]          # bias kept in f32
        if activation == "gelu":
            # TODO(synk): reference backbone may use exact (erf) GELU; tanh
            # approximation keeps the transcendental on the EUP slot.
            y = jax.nn.gelu(y)
        elif activation == "tanh":
            y = jnp.tanh(y)
        o_ref[...] = y.astype(o_ref.dtype)


def _select_linear_tiles(M, K, N, out_bytes, budget):
    """VMEM-budgeted tile selection; prefers a single full-K step."""
    tms = [c for c in (512, 256, 128, 64, 32, 16, 8) if c <= M and M % c == 0] or [M]
    tns = [c for c in (1024, 768, 512, 384, 256, 128) if c <= N and N % c == 0] or [N]
    tks = [K] + [c for c in (2048, 1024, 512, 256, 128) if c < K and K % c == 0]

    def cost(tm, tn, tk):
        return (2 * tm * tk * 2        # x block, bf16, double-buffered
                + 2 * tk * tn * 2      # w block, bf16, double-buffered
                + 2 * tn * 4           # bias, f32, double-buffered
                + 2 * tm * tn * out_bytes   # out block, double-buffered
                + tm * tn * 4)         # f32 accumulator scratch

    for tm in tms:
        for tn in tns:
            for tk in tks:             # full-K first: no K re-streaming
                if cost(tm, tn, tk) <= budget:
                    return tm, tn, tk
    return tms[-1], tns[-1], tks[-1]


def pallas_linear(x, w, b, activation="none", out_dtype=None):
    M, K = x.shape
    N = w.shape[1]
    out_dtype = out_dtype or x.dtype
    out_bytes = jnp.dtype(out_dtype).itemsize
    budget = _vmem_budget_bytes()
    tm, tn, tk = _select_linear_tiles(M, K, N, out_bytes, budget)
    grid = (M // tm, N // tn, K // tk)
    return pl.pallas_call(
        functools.partial(_linear_kernel, activation=activation),
        out_shape=jax.ShapeDtypeStruct((M, N), out_dtype),
        grid_spec=pltpu.PrefetchScalarGridSpec(
            num_scalar_prefetch=0,
            grid=grid,
            in_specs=[
                pl.BlockSpec((tm, tk), lambda i, j, k: (i, k)),
                pl.BlockSpec((tk, tn), lambda i, j, k: (k, j)),
                pl.BlockSpec((1, tn), lambda i, j, k: (0, j)),
            ],
            out_specs=pl.BlockSpec((tm, tn), lambda i, j, k: (i, j)),
            scratch_shapes=[pltpu.VMEM((tm, tn), jnp.float32)],
        ),
        compiler_params=pltpu.CompilerParams(
            dimension_semantics=("parallel", "parallel", "arbitrary"),
            vmem_limit_bytes=budget,
        ),
    )(x, w, b.reshape(1, N))


# ----------------------------------------------------------------------------
# Fused residual-add + LayerNorm (memory-bound; one HBM pass instead of three)
# ----------------------------------------------------------------------------

def _add_layernorm_kernel(x_ref, y_ref, g_ref, b_ref, o_ref, *, eps):
    x = x_ref[...].astype(jnp.float32) + y_ref[...].astype(jnp.float32)
    mean = jnp.mean(x, axis=-1, keepdims=True)
    xc = x - mean
    var = jnp.mean(xc * xc, axis=-1, keepdims=True)
    y = xc * jax.lax.rsqrt(var + eps)               # rsqrt -> EUP slot
    y = y * g_ref[...] + b_ref[...]
    o_ref[...] = y.astype(o_ref.dtype)


def _select_ln_tile(M, H, budget):
    for tm in (2048, 1024, 512, 256, 128, 64, 32, 16, 8):
        if tm <= M and M % tm == 0:
            # 2 inputs + 1 output, double-buffered, bf16; gamma/beta f32
            if (12 * tm * H + 16 * H) <= budget:
                return tm
    return M


def pallas_add_layernorm(x, y, gamma, beta, eps=1e-12):
    M, H = x.shape
    budget = _vmem_budget_bytes()
    tm = _select_ln_tile(M, H, budget)
    return pl.pallas_call(
        functools.partial(_add_layernorm_kernel, eps=eps),
        out_shape=jax.ShapeDtypeStruct((M, H), x.dtype),
        grid_spec=pltpu.PrefetchScalarGridSpec(
            num_scalar_prefetch=0,
            grid=(M // tm,),
            in_specs=[
                pl.BlockSpec((tm, H), lambda i: (i, 0)),
                pl.BlockSpec((tm, H), lambda i: (i, 0)),
                pl.BlockSpec((1, H), lambda i: (0, 0)),
                pl.BlockSpec((1, H), lambda i: (0, 0)),
            ],
            out_specs=pl.BlockSpec((tm, H), lambda i: (i, 0)),
        ),
        compiler_params=pltpu.CompilerParams(
            dimension_semantics=("parallel",),
            vmem_limit_bytes=budget,
        ),
    )(x, y, gamma.reshape(1, H), beta.reshape(1, H))


# ----------------------------------------------------------------------------
# Multi-head attention: flash-style online softmax, grid over (batch, head,
# KV tile).  Heads are split by BlockSpec (no unaligned lane slicing) and each
# head's (S, dh) output is written directly.
# ----------------------------------------------------------------------------

def _flash_mha_kernel(q_ref, k_ref, v_ref, bias_ref, o_ref,
                      m_sc, l_sc, acc_sc, *, scale):
    kv = pl.program_id(2)

    @pl.when(kv == 0)
    def _():
        m_sc[...] = jnp.full_like(m_sc, -jnp.inf)
        l_sc[...] = jnp.zeros_like(l_sc)
        acc_sc[...] = jnp.zeros_like(acc_sc)

    q = q_ref[0, 0]                                   # (S, dh)  bf16
    k = k_ref[0, 0]                                   # (tkv, dh) bf16
    v = v_ref[0, 0]                                   # (tkv, dh) bf16
    s = jax.lax.dot_general(
        q, k, (((1,), (1,)), ((), ())),
        preferred_element_type=jnp.float32) * scale   # (S, tkv) f32
    s = s + bias_ref[0]                               # (1, tkv) key-axis bias

    m_prev = m_sc[...]
    m_new = jnp.maximum(m_prev, jnp.max(s, axis=-1, keepdims=True))
    corr = jnp.exp(m_prev - m_new)
    p = jnp.exp(s - m_new)
    l_sc[...] = corr * l_sc[...] + jnp.sum(p, axis=-1, keepdims=True)
    acc_sc[...] = corr * acc_sc[...] + jnp.dot(p.astype(v.dtype), v,
                                               preferred_element_type=jnp.float32)
    m_sc[...] = m_new

    @pl.when(kv == pl.num_programs(2) - 1)
    def _():
        # exact division for the final normalization (correctness)
        o_ref[0, 0] = (acc_sc[...] / l_sc[...]).astype(o_ref.dtype)


def pallas_mha(qkv, mask_bias, B, S, nh, dh, scale):
    """qkv: (B*S, 3H) packed as [3, nh, dh] along the last axis."""
    H = nh * dh
    # Wrapper-side head split (layout plumbing in XLA) so that the kernel's
    # blocks are lane-aligned and per-head work is selected by BlockSpec.
    qkv5 = qkv.reshape(B, S, 3, nh, dh)
    q = jnp.transpose(qkv5[:, :, 0], (0, 2, 1, 3))    # (B, nh, S, dh)
    k = jnp.transpose(qkv5[:, :, 1], (0, 2, 1, 3))
    v = jnp.transpose(qkv5[:, :, 2], (0, 2, 1, 3))

    tkv = _pick_tile(S, (512, 256, 128))
    budget = _vmem_budget_bytes()
    out = pl.pallas_call(
        functools.partial(_flash_mha_kernel, scale=scale),
        out_shape=jax.ShapeDtypeStruct((B, nh, S, dh), qkv.dtype),
        grid_spec=pltpu.PrefetchScalarGridSpec(
            num_scalar_prefetch=0,
            grid=(B, nh, S // tkv),
            in_specs=[
                pl.BlockSpec((1, 1, S, dh), lambda b, h, kv: (b, h, 0, 0)),
                pl.BlockSpec((1, 1, tkv, dh), lambda b, h, kv: (b, h, kv, 0)),
                pl.BlockSpec((1, 1, tkv, dh), lambda b, h, kv: (b, h, kv, 0)),
                pl.BlockSpec((1, 1, tkv), lambda b, h, kv: (b, 0, kv)),
            ],
            out_specs=pl.BlockSpec((1, 1, S, dh), lambda b, h, kv: (b, h, 0, 0)),
            scratch_shapes=[
                pltpu.VMEM((S, 1), jnp.float32),    # running max
                pltpu.VMEM((S, 1), jnp.float32),    # running denom
                pltpu.VMEM((S, dh), jnp.float32),   # output accumulator
            ],
        ),
        compiler_params=pltpu.CompilerParams(
            dimension_semantics=("parallel", "parallel", "arbitrary"),
            vmem_limit_bytes=budget,
        ),
    )(q, k, v, mask_bias)
    return jnp.transpose(out, (0, 2, 1, 3)).reshape(B * S, H)


# ----------------------------------------------------------------------------
# Fused pooling + classification head: mean of last-4 hidden states,
# mask-aware attention-context pooling (tanh proj, @u, softmax over S, MXU
# weighted sum), then Linear(hidden, num_label) in the epilogue.
# ----------------------------------------------------------------------------

def _pool_fc_kernel(h1_ref, h2_ref, h3_ref, h4_ref, pbias_ref,
                    w_ref, b_ref, u_ref, fcw_ref, fcb_ref, o_ref):
    emb = (h1_ref[0].astype(jnp.float32) + h2_ref[0].astype(jnp.float32)
           + h3_ref[0].astype(jnp.float32) + h4_ref[0].astype(jnp.float32)) * 0.25
    emb_lo = emb.astype(h1_ref.dtype)                            # (S, H) bf16
    ctx = jnp.tanh(jnp.dot(emb_lo, w_ref[...],
                           preferred_element_type=jnp.float32) + b_ref[...])
    scores = jnp.dot(ctx, u_ref[...].astype(jnp.float32),
                     preferred_element_type=jnp.float32)         # (S, 1) f32
    scores = scores + pbias_ref[0]                               # mask padded keys
    scores = scores - jnp.max(scores, axis=0, keepdims=True)
    e = jnp.exp(scores)
    alpha = e / jnp.sum(e, axis=0, keepdims=True)                # exact softmax
    # weighted sum over S on the MXU: (S,1)^T contracted with (S,H) -> (1,H)
    pooled = jax.lax.dot_general(alpha, emb, (((0,), (0,)), ((), ())),
                                 preferred_element_type=jnp.float32)
    logits = jnp.dot(pooled, fcw_ref[...].astype(jnp.float32),
                     preferred_element_type=jnp.float32) + fcb_ref[...]
    o_ref[0] = logits.astype(o_ref.dtype)


def pallas_pool_fc(h1, h2, h3, h4, pool_bias, pool_w, pool_b, pool_u,
                   fc_w, fc_b, num_label):
    B, S, H = h1.shape
    budget = _vmem_budget_bytes()
    hs_spec = pl.BlockSpec((1, S, H), lambda b: (b, 0, 0))
    # Note: the 4 hidden states are kept as separate inputs on purpose —
    # jnp.stack-ing them first would cost an extra full HBM round trip in XLA.
    out = pl.pallas_call(
        _pool_fc_kernel,
        out_shape=jax.ShapeDtypeStruct((B, 1, num_label), jnp.float32),
        grid_spec=pltpu.PrefetchScalarGridSpec(
            num_scalar_prefetch=0,
            grid=(B,),
            in_specs=[
                hs_spec, hs_spec, hs_spec, hs_spec,
                pl.BlockSpec((1, S, 1), lambda b: (b, 0, 0)),
                pl.BlockSpec((H, H), lambda b: (0, 0)),
                pl.BlockSpec((1, H), lambda b: (0, 0)),
                pl.BlockSpec((H, 1), lambda b: (0, 0)),
                pl.BlockSpec((H, num_label), lambda b: (0, 0)),
                pl.BlockSpec((1, num_label), lambda b: (0, 0)),
            ],
            out_specs=pl.BlockSpec((1, 1, num_label), lambda b: (b, 0, 0)),
        ),
        compiler_params=pltpu.CompilerParams(
            dimension_semantics=("parallel",),
            vmem_limit_bytes=budget,
        ),
    )(h1, h2, h3, h4, pool_bias, pool_w, pool_b.reshape(1, H), pool_u,
      fc_w, fc_b.reshape(1, num_label))
    return out.reshape(B, num_label)


# ----------------------------------------------------------------------------
# Parameter initialization (deterministic, synthetic backbone)
# ----------------------------------------------------------------------------

def init_params(key, cfg):
    H, F, L = cfg["hidden"], cfg["ffn"], cfg["layers"]
    V, Smax, num_label = cfg["vocab"], cfg["max_seq"], cfg["num_label"]
    wdt = jnp.bfloat16  # weights/activations bf16, biases & LN params f32

    def nrm(k, shape, scale=0.02):
        return (scale * jax.random.normal(k, shape, dtype=jnp.float32)).astype(wdt)

    keys = iter(jax.random.split(key, 8 + 6 * L))
    params = {
        "tok_emb": nrm(next(keys), (V, H)),
        "pos_emb": nrm(next(keys), (Smax, H)),
        "emb_ln_g": jnp.ones((H,), jnp.float32),
        "emb_ln_b": jnp.zeros((H,), jnp.float32),
        "layers": [],
    }
    for _ in range(L):
        lp = {
            # fused Q|K|V projection; output columns ordered [3, nh, dh]
            "wqkv": nrm(next(keys), (H, 3 * H)),
            "bqkv": jnp.zeros((3 * H,), jnp.float32),
            "wo": nrm(next(keys), (H, H)), "bo": jnp.zeros((H,), jnp.float32),
            "ln1_g": jnp.ones((H,), jnp.float32), "ln1_b": jnp.zeros((H,), jnp.float32),
            "w1": nrm(next(keys), (H, F)), "b1": jnp.zeros((F,), jnp.float32),
            "w2": nrm(next(keys), (F, H)), "b2": jnp.zeros((H,), jnp.float32),
            "ln2_g": jnp.ones((H,), jnp.float32), "ln2_b": jnp.zeros((H,), jnp.float32),
        }
        params["layers"].append(lp)

    # attention_context pooling (units = hidden_dim)
    params["pool_w"] = nrm(next(keys), (H, H))
    params["pool_b"] = jnp.zeros((H,), jnp.float32)
    params["pool_u"] = nrm(next(keys), (H, 1))

    # fc: Linear(hidden_dim, num_label), xavier_uniform weight, zero bias
    limit = (6.0 / (H + num_label)) ** 0.5
    params["fc_w"] = jax.random.uniform(
        next(keys), (H, num_label), minval=-limit, maxval=limit,
        dtype=jnp.float32).astype(wdt)
    params["fc_b"] = jnp.zeros((num_label,), jnp.float32)
    return params


# ----------------------------------------------------------------------------
# Forward pass (mirrors CrossEncoder.forward with using_hidden_states=True,
# strategy_pooling='attention_context'; dropout is identity at inference)
# ----------------------------------------------------------------------------

def cross_encoder_forward(params, input_ids, attention_mask, cfg):
    B, S = input_ids.shape
    H, nh = cfg["hidden"], cfg["heads"]
    dh = H // nh
    scale = 1.0 / float(dh) ** 0.5

    # --- embeddings (token gather is plain-JAX glue) ---
    tok = jnp.take(params["tok_emb"], input_ids, axis=0)             # (B, S, H)
    pos = jnp.broadcast_to(params["pos_emb"][:S][None], (B, S, H))
    x = pallas_add_layernorm(tok.reshape(B * S, H), pos.reshape(B * S, H),
                             params["emb_ln_g"], params["emb_ln_b"])

    # additive attention-mask biases
    mask = attention_mask.astype(jnp.float32)                        # (B, S)
    bias_att = ((1.0 - mask) * -1e9)[:, None, :]                     # (B, 1, S)
    bias_pool = ((1.0 - mask) * -1e9)[:, :, None]                    # (B, S, 1)

    hidden_states = [x]
    for lp in params["layers"]:
        qkv = pallas_linear(x, lp["wqkv"], lp["bqkv"])               # (B*S, 3H)
        attn = pallas_mha(qkv, bias_att, B, S, nh, dh, scale)        # (B*S, H)
        attn_out = pallas_linear(attn, lp["wo"], lp["bo"])
        x = pallas_add_layernorm(x, attn_out, lp["ln1_g"], lp["ln1_b"])
        ff = pallas_linear(x, lp["w1"], lp["b1"], activation="gelu")
        ff = pallas_linear(ff, lp["w2"], lp["b2"])
        x = pallas_add_layernorm(x, ff, lp["ln2_g"], lp["ln2_b"])
        hidden_states.append(x)
        hidden_states = hidden_states[-4:]    # only last 4 states stay live

    # ExtraRoberta(method='mean') + drp1 (identity) + attention_context pooling
    # + dropout_embedding (identity) + fc, fused into a single kernel.
    # TODO(synk): external ExtraRoberta/PoolingStrategy sources unavailable;
    # using the standard last-4-layer mean + tanh attention-context pooling.
    h1, h2, h3, h4 = (h.reshape(B, S, H) for h in hidden_states[-4:])
    logits = pallas_pool_fc(h1, h2, h3, h4, bias_pool,
                            params["pool_w"], params["pool_b"], params["pool_u"],
                            params["fc_w"], params["fc_b"], cfg["num_label"])
    return logits                                                    # (B, num_label)


# ----------------------------------------------------------------------------
# Main
# ----------------------------------------------------------------------------

if __name__ == "__main__":
    cfg = dict(hidden=32, ffn=64, heads=4, layers=4, vocab=64, max_seq=16, num_label=1)
    B, S = 2, 8

    key = jax.random.PRNGKey(0)
    k_inp, k_par = jax.random.split(key)
    input_ids = jax.random.randint(k_inp, (B, S), 0, cfg["vocab"], dtype=jnp.int32)
    attention_mask = jnp.ones((B, S), dtype=jnp.int32)

    params = init_params(k_par, cfg)

    fwd = jax.jit(functools.partial(cross_encoder_forward, cfg=cfg))
    out = fwd(params, input_ids, attention_mask)
    out = jax.block_until_ready(out)

    assert out.shape == (B, cfg["num_label"])
    assert jnp.all(jnp.isfinite(out))
    print("KERNEL_OK")
</pallas_src>

<mosaic_0001>
module attributes {stable_mosaic.version = 11 : i64} {
  func.func @_add_layernorm_kernel(%arg0: i32, %arg1: memref<16x32xbf16, #tpu.memory_space<vmem>>, %arg2: memref<16x32xbf16, #tpu.memory_space<vmem>>, %arg3: memref<1x32xf32, #tpu.memory_space<vmem>>, %arg4: memref<1x32xf32, #tpu.memory_space<vmem>>, %arg5: memref<16x32xbf16, #tpu.memory_space<vmem>>) attributes {dimension_semantics = [#tpu.dimension_semantics<parallel>], iteration_bounds = array<i64: 1>, scalar_prefetch = 0 : i64, scratch_operands = 0 : i64, tpu.core_type = #tpu.core_type<tc>, window_params = [{transform_indices = @transform_0, window_bounds = array<i64: 16, 32>}, {transform_indices = @transform_1, window_bounds = array<i64: 16, 32>}, {pipeline_mode = #tpu.pipeline_mode<synchronous>, transform_indices = @transform_2, window_bounds = array<i64: 1, 32>}, {pipeline_mode = #tpu.pipeline_mode<synchronous>, transform_indices = @transform_3, window_bounds = array<i64: 1, 32>}, {transform_indices = @transform_4, window_bounds = array<i64: 16, 32>}]} {
    %c0 = arith.constant 0 : index
    %c0_0 = arith.constant 0 : index
    %0 = vector.load %arg1[%c0, %c0_0] : memref<16x32xbf16, #tpu.memory_space<vmem>>, vector<16x32xbf16>
    %1 = arith.extf %0 : vector<16x32xbf16> to vector<16x32xf32>
    %c0_1 = arith.constant 0 : index
    %c0_2 = arith.constant 0 : index
    %2 = vector.load %arg2[%c0_1, %c0_2] : memref<16x32xbf16, #tpu.memory_space<vmem>>, vector<16x32xbf16>
    %3 = arith.extf %2 : vector<16x32xbf16> to vector<16x32xf32>
    %4 = arith.addf %1, %3 : vector<16x32xf32>
    %cst = arith.constant dense<0.000000e+00> : vector<16xf32>
    %5 = vector.multi_reduction <add>, %4, %cst [1] : vector<16x32xf32> to vector<16xf32>
    %6 = vector.shape_cast %5 : vector<16xf32> to vector<16x1xf32>
    %cst_3 = arith.constant 3.200000e+01 : f32
    %7 = vector.broadcast %cst_3 : f32 to vector<16x1xf32>
    %8 = arith.divf %6, %7 : vector<16x1xf32>
    %9 = vector.broadcast %8 : vector<16x1xf32> to vector<16x32xf32>
    %10 = arith.subf %4, %9 : vector<16x32xf32>
    %11 = arith.mulf %10, %10 : vector<16x32xf32>
    %cst_4 = arith.constant dense<0.000000e+00> : vector<16xf32>
    %12 = vector.multi_reduction <add>, %11, %cst_4 [1] : vector<16x32xf32> to vector<16xf32>
    %13 = vector.shape_cast %12 : vector<16xf32> to vector<16x1xf32>
    %cst_5 = arith.constant 3.200000e+01 : f32
    %14 = vector.broadcast %cst_5 : f32 to vector<16x1xf32>
    %15 = arith.divf %13, %14 : vector<16x1xf32>
    %cst_6 = arith.constant 9.99999996E-13 : f32
    %16 = vector.broadcast %cst_6 : f32 to vector<16x1xf32>
    %17 = arith.addf %15, %16 : vector<16x1xf32>
    %18 = math.rsqrt %17 : vector<16x1xf32>
    %19 = vector.broadcast %18 : vector<16x1xf32> to vector<16x32xf32>
    %20 = arith.mulf %10, %19 : vector<16x32xf32>
    %c0_7 = arith.constant 0 : index
    %c0_8 = arith.constant 0 : index
    %21 = vector.load %arg3[%c0_7, %c0_8] : memref<1x32xf32, #tpu.memory_space<vmem>>, vector<1x32xf32>
    %22 = vector.broadcast %21 : vector<1x32xf32> to vector<16x32xf32>
    %23 = arith.mulf %20, %22 : vector<16x32xf32>
    %c0_9 = arith.constant 0 : index
    %c0_10 = arith.constant 0 : index
    %24 = vector.load %arg4[%c0_9, %c0_10] : memref<1x32xf32, #tpu.memory_space<vmem>>, vector<1x32xf32>
    %25 = vector.broadcast %24 : vector<1x32xf32> to vector<16x32xf32>
    %26 = arith.addf %23, %25 : vector<16x32xf32>
    %27 = arith.truncf %26 : vector<16x32xf32> to vector<16x32xbf16>
    %c0_11 = arith.constant 0 : index
    %c0_12 = arith.constant 0 : index
    %28 = vector.load %arg5[%c0_11, %c0_12] : memref<16x32xbf16, #tpu.memory_space<vmem>>, vector<16x32xbf16>
    tpu.vector_store %arg5[%c0_11, %c0_12], %27 {strides = array<i32>} : memref<16x32xbf16, #tpu.memory_space<vmem>>, vector<16x32xbf16>,
    return
  }
  func.func @transform_0(%arg0: i32) -> (i32, i32) {
    %c0_i32 = arith.constant 0 : i32
    %c0_i32_0 = arith.constant 0 : i32
    return %arg0, %c0_i32 : i32, i32
  }
  func.func @transform_1(%arg0: i32) -> (i32, i32) {
    %c0_i32 = arith.constant 0 : i32
    %c0_i32_0 = arith.constant 0 : i32
    return %arg0, %c0_i32 : i32, i32
  }
  func.func @transform_2(%arg0: i32) -> (i32, i32) {
    %c0_i32 = arith.constant 0 : i32
    %c0_i32_0 = arith.constant 0 : i32
    %c0_i32_1 = arith.constant 0 : i32
    return %c0_i32, %c0_i32_0 : i32, i32
  }
  func.func @transform_3(%arg0: i32) -> (i32, i32) {
    %c0_i32 = arith.constant 0 : i32
    %c0_i32_0 = arith.constant 0 : i32
    %c0_i32_1 = arith.constant 0 : i32
    return %c0_i32, %c0_i32_0 : i32, i32
  }
  func.func @transform_4(%arg0: i32) -> (i32, i32) {
    %c0_i32 = arith.constant 0 : i32
    %c0_i32_0 = arith.constant 0 : i32
    return %arg0, %c0_i32 : i32, i32
  }
}

module attributes {stable_mosaic.version = 11 : i64} {
  func.func @_linear_kernel(%arg0: i32, %arg1: i32, %arg2: i32, %arg3: memref<16x32xbf16, #tpu.memory_space<vmem>>, %arg4: memref<32x96xbf16, #tpu.memory_space<vmem>>, %arg5: memref<1x96xf32, #tpu.memory_space<vmem>>, %arg6: memref<16x96xbf16, #tpu.memory_space<vmem>>, %arg7: memref<16x96xf32, #tpu.memory_space<vmem>>) attributes {dimension_semantics = [#tpu.dimension_semantics<parallel>, #tpu.dimension_semantics<parallel>, #tpu.dimension_semantics<arbitrary>], iteration_bounds = array<i64: 1, 1, 1>, scalar_prefetch = 0 : i64, scratch_operands = 1 : i64, tpu.core_type = #tpu.core_type<tc>, window_params = [{transform_indices = @transform_0, window_bounds = array<i64: 16, 32>}, {transform_indices = @transform_1, window_bounds = array<i64: 32, 96>}, {transform_indices = @transform_2, window_bounds = array<i64: 1, 96>}, {transform_indices = @transform_3, window_bounds = array<i64: 16, 96>}]} {
    %c0_i32 = arith.constant 0 : i32
    %0 = arith.cmpi eq, %arg2, %c0_i32 : i32
    %1 = arith.extui %0 : i1 to i32
    %c0_i32_0 = arith.constant 0 : i32
    %2 = arith.cmpi ne, %1, %c0_i32_0 : i32
    scf.if %2 {
      %cst_10 = arith.constant 0.000000e+00 : f32
      %12 = vector.broadcast %cst_10 : f32 to vector<16x96xf32>
      %c0_11 = arith.constant 0 : index
      %c0_12 = arith.constant 0 : index
      %13 = vector.load %arg7[%c0_11, %c0_12] : memref<16x96xf32, #tpu.memory_space<vmem>>, vector<16x96xf32>
      tpu.vector_store %arg7[%c0_11, %c0_12], %12 {strides = array<i32>} : memref<16x96xf32, #tpu.memory_space<vmem>>, vector<16x96xf32>,
    } else {
    }
    %c0 = arith.constant 0 : index
    %c0_1 = arith.constant 0 : index
    %3 = vector.load %arg7[%c0, %c0_1] : memref<16x96xf32, #tpu.memory_space<vmem>>, vector<16x96xf32>
    %c0_2 = arith.constant 0 : index
    %c0_3 = arith.constant 0 : index
    %4 = vector.load %arg3[%c0_2, %c0_3] : memref<16x32xbf16, #tpu.memory_space<vmem>>, vector<16x32xbf16>
    %c0_4 = arith.constant 0 : index
    %c0_5 = arith.constant 0 : index
    %5 = vector.load %arg4[%c0_4, %c0_5] : memref<32x96xbf16, #tpu.memory_space<vmem>>, vector<32x96xbf16>
    %cst = arith.constant dense<0.000000e+00> : vector<16x96xf32>
    %6 = tpu.matmul %4, %5, %cst {dimension_numbers = #tpu.dot_dimension_numbers<[1], [0], [0], [1], [0, 0, 1, 1], [], []>} : vector<16x32xbf16>, vector<32x96xbf16>, vector<16x96xf32> -> vector<16x96xf32>
    %7 = arith.addf %3, %6 : vector<16x96xf32>
    %c0_6 = arith.constant 0 : index
    %c0_7 = arith.constant 0 : index
    %8 = vector.load %arg7[%c0_6, %c0_7] : memref<16x96xf32, #tpu.memory_space<vmem>>, vector<16x96xf32>
    tpu.vector_store %arg7[%c0_6, %c0_7], %7 {strides = array<i32>} : memref<16x96xf32, #tpu.memory_space<vmem>>, vector<16x96xf32>,
    %c0_i32_8 = arith.constant 0 : i32
    %9 = arith.cmpi eq, %arg2, %c0_i32_8 : i32
    %10 = arith.extui %9 : i1 to i32
    %c0_i32_9 = arith.constant 0 : i32
    %11 = arith.cmpi ne, %10, %c0_i32_9 : i32
    scf.if %11 {
      %c0_10 = arith.constant 0 : index
      %c0_11 = arith.constant 0 : index
      %12 = vector.load %arg7[%c0_10, %c0_11] : memref<16x96xf32, #tpu.memory_space<vmem>>, vector<16x96xf32>
      %c0_12 = arith.constant 0 : index
      %c0_13 = arith.constant 0 : index
      %13 = vector.load %arg5[%c0_12, %c0_13] : memref<1x96xf32, #tpu.memory_space<vmem>>, vector<1x96xf32>
      %14 = vector.broadcast %13 : vector<1x96xf32> to vector<16x96xf32>
      %15 = arith.addf %12, %14 : vector<16x96xf32>
      %16 = arith.truncf %15 : vector<16x96xf32> to vector<16x96xbf16>
      %c0_14 = arith.constant 0 : index
      %c0_15 = arith.constant 0 : index
      %17 = vector.load %arg6[%c0_14, %c0_15] : memref<16x96xbf16, #tpu.memory_space<vmem>>, vector<16x96xbf16>
      tpu.vector_store %arg6[%c0_14, %c0_15], %16 {strides = array<i32>} : memref<16x96xbf16, #tpu.memory_space<vmem>>, vector<16x96xbf16>,
    } else {
    }
    return
  }
  func.func @transform_0(%arg0: i32, %arg1: i32, %arg2: i32) -> (i32, i32) {
    %c0_i32 = arith.constant 0 : i32
    return %arg0, %arg2 : i32, i32
  }
  func.func @transform_1(%arg0: i32, %arg1: i32, %arg2: i32) -> (i32, i32) {
    %c0_i32 = arith.constant 0 : i32
    return %arg2, %arg1 : i32, i32
  }
  func.func @transform_2(%arg0: i32, %arg1: i32, %arg2: i32) -> (i32, i32) {
    %c0_i32 = arith.constant 0 : i32
    %c0_i32_0 = arith.constant 0 : i32
    return %c0_i32, %arg1 : i32, i32
  }
  func.func @transform_3(%arg0: i32, %arg1: i32, %arg2: i32) -> (i32, i32) {
    %c0_i32 = arith.constant 0 : i32
    return %arg0, %arg1 : i32, i32
  }
}

module attributes {stable_mosaic.version = 11 : i64} {
  func.func @_flash_mha_kernel(%arg0: i32, %arg1: i32, %arg2: i32, %arg3: memref<1x1x8x8xbf16, #tpu.memory_space<vmem>>, %arg4: memref<1x1x8x8xbf16, #tpu.memory_space<vmem>>, %arg5: memref<1x1x8x8xbf16, #tpu.memory_space<vmem>>, %arg6: memref<1x1x8xf32, #tpu.memory_space<vmem>>, %arg7: memref<1x1x8x8xbf16, #tpu.memory_space<vmem>>, %arg8: memref<8x1xf32, #tpu.memory_space<vmem>>, %arg9: memref<8x1xf32, #tpu.memory_space<vmem>>, %arg10: memref<8x8xf32, #tpu.memory_space<vmem>>) attributes {dimension_semantics = [#tpu.dimension_semantics<parallel>, #tpu.dimension_semantics<parallel>, #tpu.dimension_semantics<arbitrary>], iteration_bounds = array<i64: 2, 4, 1>, scalar_prefetch = 0 : i64, scratch_operands = 3 : i64, tpu.core_type = #tpu.core_type<tc>, window_params = [{transform_indices = @transform_0, window_bounds = array<i64: 1, 1, 8, 8>}, {transform_indices = @transform_1, window_bounds = array<i64: 1, 1, 8, 8>}, {transform_indices = @transform_2, window_bounds = array<i64: 1, 1, 8, 8>}, {transform_indices = @transform_3, window_bounds = array<i64: 1, 1, 8>}, {transform_indices = @transform_4, window_bounds = array<i64: 1, 1, 8, 8>}]} {
    %c0_i32 = arith.constant 0 : i32
    %0 = arith.cmpi eq, %arg2, %c0_i32 : i32
    %1 = arith.extui %0 : i1 to i32
    %c0_i32_0 = arith.constant 0 : i32
    %2 = arith.cmpi ne, %1, %c0_i32_0 : i32
    scf.if %2 {
      %cst_33 = arith.constant 0xFF800000 : f32
      %42 = vector.broadcast %cst_33 : f32 to vector<8x1xf32>
      %c0_34 = arith.constant 0 : index
      %c0_35 = arith.constant 0 : index
      %43 = vector.load %arg8[%c0_34, %c0_35] : memref<8x1xf32, #tpu.memory_space<vmem>>, vector<8x1xf32>
      tpu.vector_store %arg8[%c0_34, %c0_35], %42 {strides = array<i32>} : memref<8x1xf32, #tpu.memory_space<vmem>>, vector<8x1xf32>,
      %cst_36 = arith.constant 0.000000e+00 : f32
      %44 = vector.broadcast %cst_36 : f32 to vector<8x1xf32>
      %c0_37 = arith.constant 0 : index
      %c0_38 = arith.constant 0 : index
      %45 = vector.load %arg9[%c0_37, %c0_38] : memref<8x1xf32, #tpu.memory_space<vmem>>, vector<8x1xf32>
      tpu.vector_store %arg9[%c0_37, %c0_38], %44 {strides = array<i32>} : memref<8x1xf32, #tpu.memory_space<vmem>>, vector<8x1xf32>,
      %cst_39 = arith.constant 0.000000e+00 : f32
      %46 = vector.broadcast %cst_39 : f32 to vector<8x8xf32>
      %c0_40 = arith.constant 0 : index
      %c0_41 = arith.constant 0 : index
      %47 = vector.load %arg10[%c0_40, %c0_41] : memref<8x8xf32, #tpu.memory_space<vmem>>, vector<8x8xf32>
      tpu.vector_store %arg10[%c0_40, %c0_41], %46 {strides = array<i32>} : memref<8x8xf32, #tpu.memory_space<vmem>>, vector<8x8xf32>,
    } else {
    }
    %c0 = arith.constant 0 : index
    %c0_1 = arith.constant 0 : index
    %c0_2 = arith.constant 0 : index
    %c0_3 = arith.constant 0 : index
    %3 = vector.load %arg3[%c0, %c0_1, %c0_2, %c0_3] : memref<1x1x8x8xbf16, #tpu.memory_space<vmem>>, vector<1x1x8x8xbf16>
    %4 = vector.shape_cast %3 : vector<1x1x8x8xbf16> to vector<8x8xbf16>
    %c0_4 = arith.constant 0 : index
    %c0_5 = arith.constant 0 : index
    %c0_6 = arith.constant 0 : index
    %c0_7 = arith.constant 0 : index
    %5 = vector.load %arg4[%c0_4, %c0_5, %c0_6, %c0_7] : memref<1x1x8x8xbf16, #tpu.memory_space<vmem>>, vector<1x1x8x8xbf16>
    %6 = vector.shape_cast %5 : vector<1x1x8x8xbf16> to vector<8x8xbf16>
    %c0_8 = arith.constant 0 : index
    %c0_9 = arith.constant 0 : index
    %c0_10 = arith.constant 0 : index
    %c0_11 = arith.constant 0 : index
    %7 = vector.load %arg5[%c0_8, %c0_9, %c0_10, %c0_11] : memref<1x1x8x8xbf16, #tpu.memory_space<vmem>>, vector<1x1x8x8xbf16>
    %8 = vector.shape_cast %7 : vector<1x1x8x8xbf16> to vector<8x8xbf16>
    %cst = arith.constant dense<0.000000e+00> : vector<8x8xf32>
    %9 = tpu.matmul %4, %6, %cst {dimension_numbers = #tpu.dot_dimension_numbers<[1], [1], [0], [0], [0, 0, 1, 0], [], []>} : vector<8x8xbf16>, vector<8x8xbf16>, vector<8x8xf32> -> vector<8x8xf32>
    %cst_12 = arith.constant 0.353553385 : f32
    %10 = vector.broadcast %cst_12 : f32 to vector<8x8xf32>
    %11 = arith.mulf %9, %10 : vector<8x8xf32>
    %c0_13 = arith.constant 0 : index
    %c0_14 = arith.constant 0 : index
    %c0_15 = arith.constant 0 : index
    %12 = vector.load %arg6[%c0_13, %c0_14, %c0_15] : memref<1x1x8xf32, #tpu.memory_space<vmem>>, vector<1x1x8xf32>
    %13 = vector.shape_cast %12 : vector<1x1x8xf32> to vector<1x8xf32>
    %14 = vector.broadcast %13 : vector<1x8xf32> to vector<8x8xf32>
    %15 = arith.addf %11, %14 : vector<8x8xf32>
    %c0_16 = arith.constant 0 : index
    %c0_17 = arith.constant 0 : index
    %16 = vector.load %arg8[%c0_16, %c0_17] : memref<8x1xf32, #tpu.memory_space<vmem>>, vector<8x1xf32>
    %cst_18 = arith.constant dense<0xFF800000> : vector<8xf32>
    %17 = vector.multi_reduction <maximumf>, %15, %cst_18 [1] : vector<8x8xf32> to vector<8xf32>
    %18 = vector.shape_cast %17 : vector<8xf32> to vector<8x1xf32>
    %19 = arith.maximumf %16, %18 : vector<8x1xf32>
    %20 = arith.subf %16, %19 : vector<8x1xf32>
    %21 = math.exp %20 : vector<8x1xf32>
    %22 = vector.broadcast %19 : vector<8x1xf32> to vector<8x8xf32>
    %23 = arith.subf %15, %22 : vector<8x8xf32>
    %24 = math.exp %23 : vector<8x8xf32>
    %c0_19 = arith.constant 0 : index
    %c0_20 = arith.constant 0 : index
    %25 = vector.load %arg9[%c0_19, %c0_20] : memref<8x1xf32, #tpu.memory_space<vmem>>, vector<8x1xf32>
    %26 = arith.mulf %21, %25 : vector<8x1xf32>
    %cst_21 = arith.constant dense<0.000000e+00> : vector<8xf32>
    %27 = vector.multi_reduction <add>, %24, %cst_21 [1] : vector<8x8xf32> to vector<8xf32>
    %28 = vector.shape_cast %27 : vector<8xf32> to vector<8x1xf32>
    %29 = arith.addf %26, %28 : vector<8x1xf32>
    %c0_22 = arith.constant 0 : index
    %c0_23 = arith.constant 0 : index
    %30 = vector.load %arg9[%c0_22, %c0_23] : memref<8x1xf32, #tpu.memory_space<vmem>>, vector<8x1xf32>
    tpu.vector_store %arg9[%c0_22, %c0_23], %29 {strides = array<i32>} : memref<8x1xf32, #tpu.memory_space<vmem>>, vector<8x1xf32>,
    %c0_24 = arith.constant 0 : index
    %c0_25 = arith.constant 0 : index
    %31 = vector.load %arg10[%c0_24, %c0_25] : memref<8x8xf32, #tpu.memory_space<vmem>>, vector<8x8xf32>
    %32 = vector.broadcast %21 : vector<8x1xf32> to vector<8x8xf32>
    %33 = arith.mulf %32, %31 : vector<8x8xf32>
    %34 = arith.truncf %24 : vector<8x8xf32> to vector<8x8xbf16>
    %cst_26 = arith.constant dense<0.000000e+00> : vector<8x8xf32>
    %35 = tpu.matmul %34, %8, %cst_26 {dimension_numbers = #tpu.dot_dimension_numbers<[1], [0], [0], [1], [0, 0, 1, 1], [], []>} : vector<8x8xbf16>, vector<8x8xbf16>, vector<8x8xf32> -> vector<8x8xf32>
    %36 = arith.addf %33, %35 : vector<8x8xf32>
    %c0_27 = arith.constant 0 : index
    %c0_28 = arith.constant 0 : index
    %37 = vector.load %arg10[%c0_27, %c0_28] : memref<8x8xf32, #tpu.memory_space<vmem>>, vector<8x8xf32>
    tpu.vector_store %arg10[%c0_27, %c0_28], %36 {strides = array<i32>} : memref<8x8xf32, #tpu.memory_space<vmem>>, vector<8x8xf32>,
    %c0_29 = arith.constant 0 : index
    %c0_30 = arith.constant 0 : index
    %38 = vector.load %arg8[%c0_29, %c0_30] : memref<8x1xf32, #tpu.memory_space<vmem>>, vector<8x1xf32>
    tpu.vector_store %arg8[%c0_29, %c0_30], %19 {strides = array<i32>} : memref<8x1xf32, #tpu.memory_space<vmem>>, vector<8x1xf32>,
    %c0_i32_31 = arith.constant 0 : i32
    %39 = arith.cmpi eq, %arg2, %c0_i32_31 : i32
    %40 = arith.extui %39 : i1 to i32
    %c0_i32_32 = arith.constant 0 : i32
    %41 = arith.cmpi ne, %40, %c0_i32_32 : i32
    scf.if %41 {
      %c0_33 = arith.constant 0 : index
      %c0_34 = arith.constant 0 : index
      %42 = vector.load %arg10[%c0_33, %c0_34] : memref<8x8xf32, #tpu.memory_space<vmem>>, vector<8x8xf32>
      %c0_35 = arith.constant 0 : index
      %c0_36 = arith.constant 0 : index
      %43 = vector.load %arg9[%c0_35, %c0_36] : memref<8x1xf32, #tpu.memory_space<vmem>>, vector<8x1xf32>
      %44 = vector.broadcast %43 : vector<8x1xf32> to vector<8x8xf32>
      %45 = arith.divf %42, %44 : vector<8x8xf32>
      %46 = arith.truncf %45 : vector<8x8xf32> to vector<8x8xbf16>
      %c0_37 = arith.constant 0 : index
      %c0_38 = arith.constant 0 : index
      %c0_39 = arith.constant 0 : index
      %c0_40 = arith.constant 0 : index
      %47 = vector.load %arg7[%c0_37, %c0_38, %c0_39, %c0_40] : memref<1x1x8x8xbf16, #tpu.memory_space<vmem>>, vector<1x1x8x8xbf16>
      %48 = vector.shape_cast %47 : vector<1x1x8x8xbf16> to vector<8x8xbf16>
      %49 = vector.shape_cast %46 : vector<8x8xbf16> to vector<1x1x8x8xbf16>
      tpu.vector_store %arg7[%c0_37, %c0_38, %c0_39, %c0_40], %49 {strides = array<i32>} : memref<1x1x8x8xbf16, #tpu.memory_space<vmem>>, vector<1x1x8x8xbf16>,
    } else {
    }
    return
  }
  func.func @transform_0(%arg0: i32, %arg1: i32, %arg2: i32) -> (i32, i32, i32, i32) {
    %c0_i32 = arith.constant 0 : i32
    %c0_i32_0 = arith.constant 0 : i32
    %c0_i32_1 = arith.constant 0 : i32
    return %arg0, %arg1, %c0_i32, %c0_i32_0 : i32, i32, i32, i32
  }
  func.func @transform_1(%arg0: i32, %arg1: i32, %arg2: i32) -> (i32, i32, i32, i32) {
    %c0_i32 = arith.constant 0 : i32
    %c0_i32_0 = arith.constant 0 : i32
    return %arg0, %arg1, %arg2, %c0_i32 : i32, i32, i32, i32
  }
  func.func @transform_2(%arg0: i32, %arg1: i32, %arg2: i32) -> (i32, i32, i32, i32) {
    %c0_i32 = arith.constant 0 : i32
    %c0_i32_0 = arith.constant 0 : i32
    return %arg0, %arg1, %arg2, %c0_i32 : i32, i32, i32, i32
  }
  func.func @transform_3(%arg0: i32, %arg1: i32, %arg2: i32) -> (i32, i32, i32) {
    %c0_i32 = arith.constant 0 : i32
    %c0_i32_0 = arith.constant 0 : i32
    return %arg0, %c0_i32, %arg2 : i32, i32, i32
  }
  func.func @transform_4(%arg0: i32, %arg1: i32, %arg2: i32) -> (i32, i32, i32, i32) {
    %c0_i32 = arith.constant 0 : i32
    %c0_i32_0 = arith.constant 0 : i32
    %c0_i32_1 = arith.constant 0 : i32
    return %arg0, %arg1, %c0_i32, %c0_i32_0 : i32, i32, i32, i32
  }
}

module attributes {stable_mosaic.version = 11 : i64} {
  func.func @_linear_kernel(%arg0: i32, %arg1: i32, %arg2: i32, %arg3: memref<16x32xbf16, #tpu.memory_space<vmem>>, %arg4: memref<32x32xbf16, #tpu.memory_space<vmem>>, %arg5: memref<1x32xf32, #tpu.memory_space<vmem>>, %arg6: memref<16x32xbf16, #tpu.memory_space<vmem>>, %arg7: memref<16x32xf32, #tpu.memory_space<vmem>>) attributes {dimension_semantics = [#tpu.dimension_semantics<parallel>, #tpu.dimension_semantics<parallel>, #tpu.dimension_semantics<arbitrary>], iteration_bounds = array<i64: 1, 1, 1>, scalar_prefetch = 0 : i64, scratch_operands = 1 : i64, tpu.core_type = #tpu.core_type<tc>, window_params = [{transform_indices = @transform_0, window_bounds = array<i64: 16, 32>}, {transform_indices = @transform_1, window_bounds = array<i64: 32, 32>}, {transform_indices = @transform_2, window_bounds = array<i64: 1, 32>}, {transform_indices = @transform_3, window_bounds = array<i64: 16, 32>}]} {
    %c0_i32 = arith.constant 0 : i32
    %0 = arith.cmpi eq, %arg2, %c0_i32 : i32
    %1 = arith.extui %0 : i1 to i32
    %c0_i32_0 = arith.constant 0 : i32
    %2 = arith.cmpi ne, %1, %c0_i32_0 : i32
    scf.if %2 {
      %cst_10 = arith.constant 0.000000e+00 : f32
      %12 = vector.broadcast %cst_10 : f32 to vector<16x32xf32>
      %c0_11 = arith.constant 0 : index
      %c0_12 = arith.constant 0 : index
      %13 = vector.load %arg7[%c0_11, %c0_12] : memref<16x32xf32, #tpu.memory_space<vmem>>, vector<16x32xf32>
      tpu.vector_store %arg7[%c0_11, %c0_12], %12 {strides = array<i32>} : memref<16x32xf32, #tpu.memory_space<vmem>>, vector<16x32xf32>,
    } else {
    }
    %c0 = arith.constant 0 : index
    %c0_1 = arith.constant 0 : index
    %3 = vector.load %arg7[%c0, %c0_1] : memref<16x32xf32, #tpu.memory_space<vmem>>, vector<16x32xf32>
    %c0_2 = arith.constant 0 : index
    %c0_3 = arith.constant 0 : index
    %4 = vector.load %arg3[%c0_2, %c0_3] : memref<16x32xbf16, #tpu.memory_space<vmem>>, vector<16x32xbf16>
    %c0_4 = arith.constant 0 : index
    %c0_5 = arith.constant 0 : index
    %5 = vector.load %arg4[%c0_4, %c0_5] : memref<32x32xbf16, #tpu.memory_space<vmem>>, vector<32x32xbf16>
    %cst = arith.constant dense<0.000000e+00> : vector<16x32xf32>
    %6 = tpu.matmul %4, %5, %cst {dimension_numbers = #tpu.dot_dimension_numbers<[1], [0], [0], [1], [0, 0, 1, 1], [], []>} : vector<16x32xbf16>, vector<32x32xbf16>, vector<16x32xf32> -> vector<16x32xf32>
    %7 = arith.addf %3, %6 : vector<16x32xf32>
    %c0_6 = arith.constant 0 : index
    %c0_7 = arith.constant 0 : index
    %8 = vector.load %arg7[%c0_6, %c0_7] : memref<16x32xf32, #tpu.memory_space<vmem>>, vector<16x32xf32>
    tpu.vector_store %arg7[%c0_6, %c0_7], %7 {strides = array<i32>} : memref<16x32xf32, #tpu.memory_space<vmem>>, vector<16x32xf32>,
    %c0_i32_8 = arith.constant 0 : i32
    %9 = arith.cmpi eq, %arg2, %c0_i32_8 : i32
    %10 = arith.extui %9 : i1 to i32
    %c0_i32_9 = arith.constant 0 : i32
    %11 = arith.cmpi ne, %10, %c0_i32_9 : i32
    scf.if %11 {
      %c0_10 = arith.constant 0 : index
      %c0_11 = arith.constant 0 : index
      %12 = vector.load %arg7[%c0_10, %c0_11] : memref<16x32xf32, #tpu.memory_space<vmem>>, vector<16x32xf32>
      %c0_12 = arith.constant 0 : index
      %c0_13 = arith.constant 0 : index
      %13 = vector.load %arg5[%c0_12, %c0_13] : memref<1x32xf32, #tpu.memory_space<vmem>>, vector<1x32xf32>
      %14 = vector.broadcast %13 : vector<1x32xf32> to vector<16x32xf32>
      %15 = arith.addf %12, %14 : vector<16x32xf32>
      %16 = arith.truncf %15 : vector<16x32xf32> to vector<16x32xbf16>
      %c0_14 = arith.constant 0 : index
      %c0_15 = arith.constant 0 : index
      %17 = vector.load %arg6[%c0_14, %c0_15] : memref<16x32xbf16, #tpu.memory_space<vmem>>, vector<16x32xbf16>
      tpu.vector_store %arg6[%c0_14, %c0_15], %16 {strides = array<i32>} : memref<16x32xbf16, #tpu.memory_space<vmem>>, vector<16x32xbf16>,
    } else {
    }
    return
  }
  func.func @transform_0(%arg0: i32, %arg1: i32, %arg2: i32) -> (i32, i32) {
    %c0_i32 = arith.constant 0 : i32
    return %arg0, %arg2 : i32, i32
  }
  func.func @transform_1(%arg0: i32, %arg1: i32, %arg2: i32) -> (i32, i32) {
    %c0_i32 = arith.constant 0 : i32
    return %arg2, %arg1 : i32, i32
  }
  func.func @transform_2(%arg0: i32, %arg1: i32, %arg2: i32) -> (i32, i32) {
    %c0_i32 = arith.constant 0 : i32
    %c0_i32_0 = arith.constant 0 : i32
    return %c0_i32, %arg1 : i32, i32
  }
  func.func @transform_3(%arg0: i32, %arg1: i32, %arg2: i32) -> (i32, i32) {
    %c0_i32 = arith.constant 0 : i32
    return %arg0, %arg1 : i32, i32
  }
}

module attributes {stable_mosaic.version = 11 : i64} {
  func.func @_linear_kernel(%arg0: i32, %arg1: i32, %arg2: i32, %arg3: memref<16x32xbf16, #tpu.memory_space<vmem>>, %arg4: memref<32x64xbf16, #tpu.memory_space<vmem>>, %arg5: memref<1x64xf32, #tpu.memory_space<vmem>>, %arg6: memref<16x64xbf16, #tpu.memory_space<vmem>>, %arg7: memref<16x64xf32, #tpu.memory_space<vmem>>) attributes {dimension_semantics = [#tpu.dimension_semantics<parallel>, #tpu.dimension_semantics<parallel>, #tpu.dimension_semantics<arbitrary>], iteration_bounds = array<i64: 1, 1, 1>, scalar_prefetch = 0 : i64, scratch_operands = 1 : i64, tpu.core_type = #tpu.core_type<tc>, window_params = [{transform_indices = @transform_0, window_bounds = array<i64: 16, 32>}, {transform_indices = @transform_1, window_bounds = array<i64: 32, 64>}, {transform_indices = @transform_2, window_bounds = array<i64: 1, 64>}, {transform_indices = @transform_3, window_bounds = array<i64: 16, 64>}]} {
    %c0_i32 = arith.constant 0 : i32
    %0 = arith.cmpi eq, %arg2, %c0_i32 : i32
    %1 = arith.extui %0 : i1 to i32
    %c0_i32_0 = arith.constant 0 : i32
    %2 = arith.cmpi ne, %1, %c0_i32_0 : i32
    scf.if %2 {
      %cst_10 = arith.constant 0.000000e+00 : f32
      %12 = vector.broadcast %cst_10 : f32 to vector<16x64xf32>
      %c0_11 = arith.constant 0 : index
      %c0_12 = arith.constant 0 : index
      %13 = vector.load %arg7[%c0_11, %c0_12] : memref<16x64xf32, #tpu.memory_space<vmem>>, vector<16x64xf32>
      tpu.vector_store %arg7[%c0_11, %c0_12], %12 {strides = array<i32>} : memref<16x64xf32, #tpu.memory_space<vmem>>, vector<16x64xf32>,
    } else {
    }
    %c0 = arith.constant 0 : index
    %c0_1 = arith.constant 0 : index
    %3 = vector.load %arg7[%c0, %c0_1] : memref<16x64xf32, #tpu.memory_space<vmem>>, vector<16x64xf32>
    %c0_2 = arith.constant 0 : index
    %c0_3 = arith.constant 0 : index
    %4 = vector.load %arg3[%c0_2, %c0_3] : memref<16x32xbf16, #tpu.memory_space<vmem>>, vector<16x32xbf16>
    %c0_4 = arith.constant 0 : index
    %c0_5 = arith.constant 0 : index
    %5 = vector.load %arg4[%c0_4, %c0_5] : memref<32x64xbf16, #tpu.memory_space<vmem>>, vector<32x64xbf16>
    %cst = arith.constant dense<0.000000e+00> : vector<16x64xf32>
    %6 = tpu.matmul %4, %5, %cst {dimension_numbers = #tpu.dot_dimension_numbers<[1], [0], [0], [1], [0, 0, 1, 1], [], []>} : vector<16x32xbf16>, vector<32x64xbf16>, vector<16x64xf32> -> vector<16x64xf32>
    %7 = arith.addf %3, %6 : vector<16x64xf32>
    %c0_6 = arith.constant 0 : index
    %c0_7 = arith.constant 0 : index
    %8 = vector.load %arg7[%c0_6, %c0_7] : memref<16x64xf32, #tpu.memory_space<vmem>>, vector<16x64xf32>
    tpu.vector_store %arg7[%c0_6, %c0_7], %7 {strides = array<i32>} : memref<16x64xf32, #tpu.memory_space<vmem>>, vector<16x64xf32>,
    %c0_i32_8 = arith.constant 0 : i32
    %9 = arith.cmpi eq, %arg2, %c0_i32_8 : i32
    %10 = arith.extui %9 : i1 to i32
    %c0_i32_9 = arith.constant 0 : i32
    %11 = arith.cmpi ne, %10, %c0_i32_9 : i32
    scf.if %11 {
      %c0_10 = arith.constant 0 : index
      %c0_11 = arith.constant 0 : index
      %12 = vector.load %arg7[%c0_10, %c0_11] : memref<16x64xf32, #tpu.memory_space<vmem>>, vector<16x64xf32>
      %c0_12 = arith.constant 0 : index
      %c0_13 = arith.constant 0 : index
      %13 = vector.load %arg5[%c0_12, %c0_13] : memref<1x64xf32, #tpu.memory_space<vmem>>, vector<1x64xf32>
      %14 = vector.broadcast %13 : vector<1x64xf32> to vector<16x64xf32>
      %15 = arith.addf %12, %14 : vector<16x64xf32>
      %16 = arith.mulf %15, %15 : vector<16x64xf32>
      %17 = arith.mulf %15, %16 : vector<16x64xf32>
      %cst_14 = arith.constant 4.471500e-02 : f32
      %18 = vector.broadcast %cst_14 : f32 to vector<16x64xf32>
      %19 = arith.mulf %18, %17 : vector<16x64xf32>
      %20 = arith.addf %15, %19 : vector<16x64xf32>
      %cst_15 = arith.constant 0.797884583 : f32
      %21 = vector.broadcast %cst_15 : f32 to vector<16x64xf32>
      %22 = arith.mulf %21, %20 : vector<16x64xf32>
      %23 = math.tanh %22 : vector<16x64xf32>
      %cst_16 = arith.constant 1.000000e+00 : f32
      %24 = vector.broadcast %cst_16 : f32 to vector<16x64xf32>
      %25 = arith.addf %24, %23 : vector<16x64xf32>
      %cst_17 = arith.constant 5.000000e-01 : f32
      %26 = vector.broadcast %cst_17 : f32 to vector<16x64xf32>
      %27 = arith.mulf %26, %25 : vector<16x64xf32>
      %28 = arith.mulf %15, %27 : vector<16x64xf32>
      %29 = arith.truncf %28 : vector<16x64xf32> to vector<16x64xbf16>
      %c0_18 = arith.constant 0 : index
      %c0_19 = arith.constant 0 : index
      %30 = vector.load %arg6[%c0_18, %c0_19] : memref<16x64xbf16, #tpu.memory_space<vmem>>, vector<16x64xbf16>
      tpu.vector_store %arg6[%c0_18, %c0_19], %29 {strides = array<i32>} : memref<16x64xbf16, #tpu.memory_space<vmem>>, vector<16x64xbf16>,
    } else {
    }
    return
  }
  func.func @transform_0(%arg0: i32, %arg1: i32, %arg2: i32) -> (i32, i32) {
    %c0_i32 = arith.constant 0 : i32
    return %arg0, %arg2 : i32, i32
  }
  func.func @transform_1(%arg0: i32, %arg1: i32, %arg2: i32) -> (i32, i32) {
    %c0_i32 = arith.constant 0 : i32
    return %arg2, %arg1 : i32, i32
  }
  func.func @transform_2(%arg0: i32, %arg1: i32, %arg2: i32) -> (i32, i32) {
    %c0_i32 = arith.constant 0 : i32
    %c0_i32_0 = arith.constant 0 : i32
    return %c0_i32, %arg1 : i32, i32
  }
  func.func @transform_3(%arg0: i32, %arg1: i32, %arg2: i32) -> (i32, i32) {
    %c0_i32 = arith.constant 0 : i32
    return %arg0, %arg1 : i32, i32
  }
}

module attributes {stable_mosaic.version = 11 : i64} {
  func.func @_linear_kernel(%arg0: i32, %arg1: i32, %arg2: i32, %arg3: memref<16x64xbf16, #tpu.memory_space<vmem>>, %arg4: memref<64x32xbf16, #tpu.memory_space<vmem>>, %arg5: memref<1x32xf32, #tpu.memory_space<vmem>>, %arg6: memref<16x32xbf16, #tpu.memory_space<vmem>>, %arg7: memref<16x32xf32, #tpu.memory_space<vmem>>) attributes {dimension_semantics = [#tpu.dimension_semantics<parallel>, #tpu.dimension_semantics<parallel>, #tpu.dimension_semantics<arbitrary>], iteration_bounds = array<i64: 1, 1, 1>, scalar_prefetch = 0 : i64, scratch_operands = 1 : i64, tpu.core_type = #tpu.core_type<tc>, window_params = [{transform_indices = @transform_0, window_bounds = array<i64: 16, 64>}, {transform_indices = @transform_1, window_bounds = array<i64: 64, 32>}, {transform_indices = @transform_2, window_bounds = array<i64: 1, 32>}, {transform_indices = @transform_3, window_bounds = array<i64: 16, 32>}]} {
    %c0_i32 = arith.constant 0 : i32
    %0 = arith.cmpi eq, %arg2, %c0_i32 : i32
    %1 = arith.extui %0 : i1 to i32
    %c0_i32_0 = arith.constant 0 : i32
    %2 = arith.cmpi ne, %1, %c0_i32_0 : i32
    scf.if %2 {
      %cst_10 = arith.constant 0.000000e+00 : f32
      %12 = vector.broadcast %cst_10 : f32 to vector<16x32xf32>
      %c0_11 = arith.constant 0 : index
      %c0_12 = arith.constant 0 : index
      %13 = vector.load %arg7[%c0_11, %c0_12] : memref<16x32xf32, #tpu.memory_space<vmem>>, vector<16x32xf32>
      tpu.vector_store %arg7[%c0_11, %c0_12], %12 {strides = array<i32>} : memref<16x32xf32, #tpu.memory_space<vmem>>, vector<16x32xf32>,
    } else {
    }
    %c0 = arith.constant 0 : index
    %c0_1 = arith.constant 0 : index
    %3 = vector.load %arg7[%c0, %c0_1] : memref<16x32xf32, #tpu.memory_space<vmem>>, vector<16x32xf32>
    %c0_2 = arith.constant 0 : index
    %c0_3 = arith.constant 0 : index
    %4 = vector.load %arg3[%c0_2, %c0_3] : memref<16x64xbf16, #tpu.memory_space<vmem>>, vector<16x64xbf16>
    %c0_4 = arith.constant 0 : index
    %c0_5 = arith.constant 0 : index
    %5 = vector.load %arg4[%c0_4, %c0_5] : memref<64x32xbf16, #tpu.memory_space<vmem>>, vector<64x32xbf16>
    %cst = arith.constant dense<0.000000e+00> : vector<16x32xf32>
    %6 = tpu.matmul %4, %5, %cst {dimension_numbers = #tpu.dot_dimension_numbers<[1], [0], [0], [1], [0, 0, 1, 1], [], []>} : vector<16x64xbf16>, vector<64x32xbf16>, vector<16x32xf32> -> vector<16x32xf32>
    %7 = arith.addf %3, %6 : vector<16x32xf32>
    %c0_6 = arith.constant 0 : index
    %c0_7 = arith.constant 0 : index
    %8 = vector.load %arg7[%c0_6, %c0_7] : memref<16x32xf32, #tpu.memory_space<vmem>>, vector<16x32xf32>
    tpu.vector_store %arg7[%c0_6, %c0_7], %7 {strides = array<i32>} : memref<16x32xf32, #tpu.memory_space<vmem>>, vector<16x32xf32>,
    %c0_i32_8 = arith.constant 0 : i32
    %9 = arith.cmpi eq, %arg2, %c0_i32_8 : i32
    %10 = arith.extui %9 : i1 to i32
    %c0_i32_9 = arith.constant 0 : i32
    %11 = arith.cmpi ne, %10, %c0_i32_9 : i32
    scf.if %11 {
      %c0_10 = arith.constant 0 : index
      %c0_11 = arith.constant 0 : index
      %12 = vector.load %arg7[%c0_10, %c0_11] : memref<16x32xf32, #tpu.memory_space<vmem>>, vector<16x32xf32>
      %c0_12 = arith.constant 0 : index
      %c0_13 = arith.constant 0 : index
      %13 = vector.load %arg5[%c0_12, %c0_13] : memref<1x32xf32, #tpu.memory_space<vmem>>, vector<1x32xf32>
      %14 = vector.broadcast %13 : vector<1x32xf32> to vector<16x32xf32>
      %15 = arith.addf %12, %14 : vector<16x32xf32>
      %16 = arith.truncf %15 : vector<16x32xf32> to vector<16x32xbf16>
      %c0_14 = arith.constant 0 : index
      %c0_15 = arith.constant 0 : index
      %17 = vector.load %arg6[%c0_14, %c0_15] : memref<16x32xbf16, #tpu.memory_space<vmem>>, vector<16x32xbf16>
      tpu.vector_store %arg6[%c0_14, %c0_15], %16 {strides = array<i32>} : memref<16x32xbf16, #tpu.memory_space<vmem>>, vector<16x32xbf16>,
    } else {
    }
    return
  }
  func.func @transform_0(%arg0: i32, %arg1: i32, %arg2: i32) -> (i32, i32) {
    %c0_i32 = arith.constant 0 : i32
    return %arg0, %arg2 : i32, i32
  }
  func.func @transform_1(%arg0: i32, %arg1: i32, %arg2: i32) -> (i32, i32) {
    %c0_i32 = arith.constant 0 : i32
    return %arg2, %arg1 : i32, i32
  }
  func.func @transform_2(%arg0: i32, %arg1: i32, %arg2: i32) -> (i32, i32) {
    %c0_i32 = arith.constant 0 : i32
    %c0_i32_0 = arith.constant 0 : i32
    return %c0_i32, %arg1 : i32, i32
  }
  func.func @transform_3(%arg0: i32, %arg1: i32, %arg2: i32) -> (i32, i32) {
    %c0_i32 = arith.constant 0 : i32
    return %arg0, %arg1 : i32, i32
  }
}

module attributes {stable_mosaic.version = 11 : i64} {
  func.func @_pool_fc_kernel(%arg0: i32, %arg1: memref<1x8x32xbf16, #tpu.memory_space<vmem>>, %arg2: memref<1x8x32xbf16, #tpu.memory_space<vmem>>, %arg3: memref<1x8x32xbf16, #tpu.memory_space<vmem>>, %arg4: memref<1x8x32xbf16, #tpu.memory_space<vmem>>, %arg5: memref<1x8x1xf32, #tpu.memory_space<vmem>>, %arg6: memref<32x32xbf16, #tpu.memory_space<vmem>>, %arg7: memref<1x32xf32, #tpu.memory_space<vmem>>, %arg8: memref<32x1xbf16, #tpu.memory_space<vmem>>, %arg9: memref<32x1xbf16, #tpu.memory_space<vmem>>, %arg10: memref<1x1xf32, #tpu.memory_space<vmem>>, %arg11: memref<1x1x1xf32, #tpu.memory_space<vmem>>) attributes {dimension_semantics = [#tpu.dimension_semantics<parallel>], iteration_bounds = array<i64: 2>, scalar_prefetch = 0 : i64, scratch_operands = 0 : i64, tpu.core_type = #tpu.core_type<tc>, window_params = [{transform_indices = @transform_0, window_bounds = array<i64: 1, 8, 32>}, {transform_indices = @transform_1, window_bounds = array<i64: 1, 8, 32>}, {transform_indices = @transform_2, window_bounds = array<i64: 1, 8, 32>}, {transform_indices = @transform_3, window_bounds = array<i64: 1, 8, 32>}, {transform_indices = @transform_4, window_bounds = array<i64: 1, 8, 1>}, {pipeline_mode = #tpu.pipeline_mode<synchronous>, transform_indices = @transform_5, window_bounds = array<i64: 32, 32>}, {pipeline_mode = #tpu.pipeline_mode<synchronous>, transform_indices = @transform_6, window_bounds = array<i64: 1, 32>}, {pipeline_mode = #tpu.pipeline_mode<synchronous>, transform_indices = @transform_7, window_bounds = array<i64: 32, 1>}, {pipeline_mode = #tpu.pipeline_mode<synchronous>, transform_indices = @transform_8, window_bounds = array<i64: 32, 1>}, {pipeline_mode = #tpu.pipeline_mode<synchronous>, transform_indices = @transform_9, window_bounds = array<i64: 1, 1>}, {transform_indices = @transform_10, window_bounds = array<i64: 1, 1, 1>}]} {
    %c0 = arith.constant 0 : index
    %c0_0 = arith.constant 0 : index
    %c0_1 = arith.constant 0 : index
    %0 = vector.load %arg1[%c0, %c0_0, %c0_1] : memref<1x8x32xbf16, #tpu.memory_space<vmem>>, vector<1x8x32xbf16>
    %1 = vector.shape_cast %0 : vector<1x8x32xbf16> to vector<8x32xbf16>
    %2 = arith.extf %1 : vector<8x32xbf16> to vector<8x32xf32>
    %c0_2 = arith.constant 0 : index
    %c0_3 = arith.constant 0 : index
    %c0_4 = arith.constant 0 : index
    %3 = vector.load %arg2[%c0_2, %c0_3, %c0_4] : memref<1x8x32xbf16, #tpu.memory_space<vmem>>, vector<1x8x32xbf16>
    %4 = vector.shape_cast %3 : vector<1x8x32xbf16> to vector<8x32xbf16>
    %5 = arith.extf %4 : vector<8x32xbf16> to vector<8x32xf32>
    %6 = arith.addf %2, %5 : vector<8x32xf32>
    %c0_5 = arith.constant 0 : index
    %c0_6 = arith.constant 0 : index
    %c0_7 = arith.constant 0 : index
    %7 = vector.load %arg3[%c0_5, %c0_6, %c0_7] : memref<1x8x32xbf16, #tpu.memory_space<vmem>>, vector<1x8x32xbf16>
    %8 = vector.shape_cast %7 : vector<1x8x32xbf16> to vector<8x32xbf16>
    %9 = arith.extf %8 : vector<8x32xbf16> to vector<8x32xf32>
    %10 = arith.addf %6, %9 : vector<8x32xf32>
    %c0_8 = arith.constant 0 : index
    %c0_9 = arith.constant 0 : index
    %c0_10 = arith.constant 0 : index
    %11 = vector.load %arg4[%c0_8, %c0_9, %c0_10] : memref<1x8x32xbf16, #tpu.memory_space<vmem>>, vector<1x8x32xbf16>
    %12 = vector.shape_cast %11 : vector<1x8x32xbf16> to vector<8x32xbf16>
    %13 = arith.extf %12 : vector<8x32xbf16> to vector<8x32xf32>
    %14 = arith.addf %10, %13 : vector<8x32xf32>
    %cst = arith.constant 2.500000e-01 : f32
    %15 = vector.broadcast %cst : f32 to vector<8x32xf32>
    %16 = arith.mulf %14, %15 : vector<8x32xf32>
    %17 = arith.truncf %16 : vector<8x32xf32> to vector<8x32xbf16>
    %c0_11 = arith.constant 0 : index
    %c0_12 = arith.constant 0 : index
    %18 = vector.load %arg6[%c0_11, %c0_12] : memref<32x32xbf16, #tpu.memory_space<vmem>>, vector<32x32xbf16>
    %cst_13 = arith.constant dense<0.000000e+00> : vector<8x32xf32>
    %19 = tpu.matmul %17, %18, %cst_13 {dimension_numbers = #tpu.dot_dimension_numbers<[1], [0], [0], [1], [0, 0, 1, 1], [], []>} : vector<8x32xbf16>, vector<32x32xbf16>, vector<8x32xf32> -> vector<8x32xf32>
    %c0_14 = arith.constant 0 : index
    %c0_15 = arith.constant 0 : index
    %20 = vector.load %arg7[%c0_14, %c0_15] : memref<1x32xf32, #tpu.memory_space<vmem>>, vector<1x32xf32>
    %21 = vector.broadcast %20 : vector<1x32xf32> to vector<8x32xf32>
    %22 = arith.addf %19, %21 : vector<8x32xf32>
    %23 = math.tanh %22 : vector<8x32xf32>
    %c0_16 = arith.constant 0 : index
    %c0_17 = arith.constant 0 : index
    %24 = vector.load %arg8[%c0_16, %c0_17] : memref<32x1xbf16, #tpu.memory_space<vmem>>, vector<32x1xbf16>
    %25 = arith.extf %24 : vector<32x1xbf16> to vector<32x1xf32>
    %cst_18 = arith.constant dense<0.000000e+00> : vector<8x1xf32>
    %26 = tpu.matmul %23, %25, %cst_18 {dimension_numbers = #tpu.dot_dimension_numbers<[1], [0], [0], [1], [0, 0, 1, 1], [], []>} : vector<8x32xf32>, vector<32x1xf32>, vector<8x1xf32> -> vector<8x1xf32>
    %c0_19 = arith.constant 0 : index
    %c0_20 = arith.constant 0 : index
    %c0_21 = arith.constant 0 : index
    %27 = vector.load %arg5[%c0_19, %c0_20, %c0_21] : memref<1x8x1xf32, #tpu.memory_space<vmem>>, vector<1x8x1xf32>
    %28 = vector.shape_cast %27 : vector<1x8x1xf32> to vector<8x1xf32>
    %29 = arith.addf %26, %28 : vector<8x1xf32>
    %cst_22 = arith.constant dense<0xFF800000> : vector<1xf32>
    %30 = vector.multi_reduction <maximumf>, %29, %cst_22 [0] : vector<8x1xf32> to vector<1xf32>
    %31 = vector.shape_cast %30 : vector<1xf32> to vector<1x1xf32>
    %32 = vector.broadcast %31 : vector<1x1xf32> to vector<8x1xf32>
    %33 = arith.subf %29, %32 : vector<8x1xf32>
    %34 = math.exp %33 : vector<8x1xf32>
    %cst_23 = arith.constant dense<0.000000e+00> : vector<1xf32>
    %35 = vector.multi_reduction <add>, %34, %cst_23 [0] : vector<8x1xf32> to vector<1xf32>
    %36 = vector.shape_cast %35 : vector<1xf32> to vector<1x1xf32>
    %37 = vector.broadcast %36 : vector<1x1xf32> to vector<8x1xf32>
    %38 = arith.divf %34, %37 : vector<8x1xf32>
    %cst_24 = arith.constant dense<0.000000e+00> : vector<1x32xf32>
    %39 = tpu.matmul %38, %16, %cst_24 {dimension_numbers = #tpu.dot_dimension_numbers<[0], [0], [1], [1], [0, 1, 1, 1], [], []>} : vector<8x1xf32>, vector<8x32xf32>, vector<1x32xf32> -> vector<1x32xf32>
    %c0_25 = arith.constant 0 : index
    %c0_26 = arith.constant 0 : index
    %40 = vector.load %arg9[%c0_25, %c0_26] : memref<32x1xbf16, #tpu.memory_space<vmem>>, vector<32x1xbf16>
    %41 = arith.extf %40 : vector<32x1xbf16> to vector<32x1xf32>
    %cst_27 = arith.constant dense<0.000000e+00> : vector<1x1xf32>
    %42 = tpu.matmul %39, %41, %cst_27 {dimension_numbers = #tpu.dot_dimension_numbers<[1], [0], [0], [1], [0, 0, 1, 1], [], []>} : vector<1x32xf32>, vector<32x1xf32>, vector<1x1xf32> -> vector<1x1xf32>
    %c0_28 = arith.constant 0 : index
    %c0_29 = arith.constant 0 : index
    %43 = vector.load %arg10[%c0_28, %c0_29] : memref<1x1xf32, #tpu.memory_space<vmem>>, vector<1x1xf32>
    %44 = arith.addf %42, %43 : vector<1x1xf32>
    %c0_30 = arith.constant 0 : index
    %c0_31 = arith.constant 0 : index
    %c0_32 = arith.constant 0 : index
    %45 = vector.load %arg11[%c0_30, %c0_31, %c0_32] : memref<1x1x1xf32, #tpu.memory_space<vmem>>, vector<1x1x1xf32>
    %46 = vector.shape_cast %45 : vector<1x1x1xf32> to vector<1x1xf32>
    %47 = vector.shape_cast %44 : vector<1x1xf32> to vector<1x1x1xf32>
    tpu.vector_store %arg11[%c0_30, %c0_31, %c0_32], %47 {strides = array<i32>} : memref<1x1x1xf32, #tpu.memory_space<vmem>>, vector<1x1x1xf32>,
    return
  }
  func.func @transform_0(%arg0: i32) -> (i32, i32, i32) {
    %c0_i32 = arith.constant 0 : i32
    %c0_i32_0 = arith.constant 0 : i32
    %c0_i32_1 = arith.constant 0 : i32
    return %arg0, %c0_i32, %c0_i32_0 : i32, i32, i32
  }
  func.func @transform_1(%arg0: i32) -> (i32, i32, i32) {
    %c0_i32 = arith.constant 0 : i32
    %c0_i32_0 = arith.constant 0 : i32
    %c0_i32_1 = arith.constant 0 : i32
    return %arg0, %c0_i32, %c0_i32_0 : i32, i32, i32
  }
  func.func @transform_2(%arg0: i32) -> (i32, i32, i32) {
    %c0_i32 = arith.constant 0 : i32
    %c0_i32_0 = arith.constant 0 : i32
    %c0_i32_1 = arith.constant 0 : i32
    return %arg0, %c0_i32, %c0_i32_0 : i32, i32, i32
  }
  func.func @transform_3(%arg0: i32) -> (i32, i32, i32) {
    %c0_i32 = arith.constant 0 : i32
    %c0_i32_0 = arith.constant 0 : i32
    %c0_i32_1 = arith.constant 0 : i32
    return %arg0, %c0_i32, %c0_i32_0 : i32, i32, i32
  }
  func.func @transform_4(%arg0: i32) -> (i32, i32, i32) {
    %c0_i32 = arith.constant 0 : i32
    %c0_i32_0 = arith.constant 0 : i32
    %c0_i32_1 = arith.constant 0 : i32
    return %arg0, %c0_i32, %c0_i32_0 : i32, i32, i32
  }
  func.func @transform_5(%arg0: i32) -> (i32, i32) {
    %c0_i32 = arith.constant 0 : i32
    %c0_i32_0 = arith.constant 0 : i32
    %c0_i32_1 = arith.constant 0 : i32
    return %c0_i32, %c0_i32_0 : i32, i32
  }
  func.func @transform_6(%arg0: i32) -> (i32, i32) {
    %c0_i32 = arith.constant 0 : i32
    %c0_i32_0 = arith.constant 0 : i32
    %c0_i32_1 = arith.constant 0 : i32
    return %c0_i32, %c0_i32_0 : i32, i32
  }
  func.func @transform_7(%arg0: i32) -> (i32, i32) {
    %c0_i32 = arith.constant 0 : i32
    %c0_i32_0 = arith.constant 0 : i32
    %c0_i32_1 = arith.constant 0 : i32
    return %c0_i32, %c0_i32_0 : i32, i32
  }
  func.func @transform_8(%arg0: i32) -> (i32, i32) {
    %c0_i32 = arith.constant 0 : i32
    %c0_i32_0 = arith.constant 0 : i32
    %c0_i32_1 = arith.constant 0 : i32
    return %c0_i32, %c0_i32_0 : i32, i32
  }
  func.func @transform_9(%arg0: i32) -> (i32, i32) {
    %c0_i32 = arith.constant 0 : i32
    %c0_i32_0 = arith.constant 0 : i32
    %c0_i32_1 = arith.constant 0 : i32
    return %c0_i32, %c0_i32_0 : i32, i32
  }
  func.func @transform_10(%arg0: i32) -> (i32, i32, i32) {
    %c0_i32 = arith.constant 0 : i32
    %c0_i32_0 = arith.constant 0 : i32
    %c0_i32_1 = arith.constant 0 : i32
    return %arg0, %c0_i32, %c0_i32_0 : i32, i32, i32
  }
}

</mosaic_0001>

<bundles_post_ra>
// kernel: cross_encoder_forward.30
= control target key start
LH: loop header
LB: loop body
LE: loop exit
PB: predicated region body
PF: predicated region fallthrough
CT: control target
= control target key end

     0   :  { %vm27_vm0 = vcmask 261120   ;;  %vm81_vm1 = vcmask 257024   ;;  %s153_s0 = inlined_call_operand.vmem [shape: bf16[16,32], index: 0, kind: input, shape index: {}]   ;;  %s154_s1 = inlined_call_operand.vmem [shape: bf16[16,32], index: 1, kind: input, shape index: {}]   ;;  %s155_s2 = inlined_call_operand.vmem [shape: f32[1,32], index: 2, kind: input, shape index: {}]   ;;  %s156_s3 = inlined_call_operand.vmem [shape: f32[1,32], index: 3, kind: input, shape index: {}]   ;;  %s157_s4 = inlined_call_operand.vmem [shape: bf16[16,32], index: 4, kind: output, shape index: {}]  }
   0x1   :  { %v95_v0 = vld [vmem:[%s153_s0] sm:$0xff]  }
   0x2   :  { %v99_v1 = vld [vmem:[%s154_s1] sm:$0xff]   ;;  %v96_v2 = vunpack.c.l.bf16 %v95_v0  ;;  %v97_v4 = vunpack.c.h.bf16 %v95_v0 }
   0x3   :  { %v100_v3 = vunpack.c.l.bf16 %v99_v1  ;;  %v101_v5 = vunpack.c.h.bf16 %v99_v1  ;;  %v88_v27 = vld [vmem:[%s155_s2] ss:$0 sm:$0xff] }
   0x4   :  { %v89_v29 = vld [vmem:[%s156_s3] ss:$0 sm:$0xff] }
   0x5   :  { %v25_v6 = vadd.f32 %v100_v3, %v96_v2  ;;  %v26_v7 = vadd.f32 %v101_v5, %v97_v4 }
   0x7   :  { %v28_v8 = vsel %vm27_vm0, %v25_v6, 0.0  ;;  %v31_v9 = vsel %vm27_vm0, %v26_v7, 0.0 }
   0x8   :  { %29 = vadd.xlane.f32.xlu0 %v28_v8 }
   0xc   :  { %32 = vadd.xlane.f32.xlu0 %v31_v9 }
  0x91   :  { %v30_v10 = vpop.xlane.xlu0 %29 }
  0x92   :  { %v35_v11 = vmul.f32 0.03125, %v30_v10 }
  0x94   :  { %v37_v12 = vsub.f32 %v25_v6, %v35_v11 }
  0x95   :  { %v33_v13 = vpop.xlane.xlu0 %32 }
  0x96   :  { %v36_v14 = vmul.f32 0.03125, %v33_v13  ;;  %v39_v15 = vmul.f32 %v37_v12, %v37_v12 }
  0x98   :  { %v38_v16 = vsub.f32 %v26_v7, %v36_v14  ;;  %v41_v17 = vsel %vm27_vm0, %v39_v15, 0.0 }
  0x99   :  { %42 = vadd.xlane.f32.xlu1 %v41_v17 }
  0x9a   :  { %v40_v18 = vmul.f32 %v38_v16, %v38_v16 }
  0x9c   :  { %v44_v19 = vsel %vm27_vm0, %v40_v18, 0.0 }
  0x9d   :  { %45 = vadd.xlane.f32.xlu1 %v44_v19 }
 0x122   :  { %v43_v20 = vpop.xlane.xlu1 %42 }
 0x123   :  { %v47_v21 = vmul.f32 0.03125, %v43_v20 }
 0x125   :  { %v49_v22 = vadd.f32 1e-12, %v47_v21 }
 0x126   :  { %v46_v23 = vpop.xlane.xlu1 %45 }
 0x127   :  { %102 = vrsqrt.f32 %v49_v22  ;;  %v48_v24 = vmul.f32 0.03125, %v46_v23 }
 0x129   :  { %v50_v25 = vadd.f32 1e-12, %v48_v24 }
 0x12b   :  { %104 = vrsqrt.f32 %v50_v25 }
 0x134   :  { %v103_v26 = vpop.eup %102 }
 0x135   :  { %v53_v28 = vmul.f32 %v103_v26, %v37_v12 }
 0x137   :  { %v62_v30 = vmul.f32 %v88_v27, %v53_v28 }
 0x138   :  { %v105_v31 = vpop.eup %104 }
 0x139   :  { %v71_v32 = vadd.f32 %v89_v29, %v62_v30  ;;  %v54_v33 = vmul.f32 %v105_v31, %v38_v16 }
 0x13b   :  { %v92_v34 = vpack.c.bf16 %v71_v32, %v71_v32  ;;  %v63_v35 = vmul.f32 %v88_v27, %v54_v33 }
 0x13d   :  { %82 = vst.msk [vmem:[%s157_s4] sm:$0xf] %vm81_vm1, %v92_v34  ;;  %v72_v36 = vadd.f32 %v89_v29, %v63_v35 }
 0x13f   :  { %v93_v37 = vpack.c.bf16 %v72_v36, %v72_v36 }
 0x141   :  { %83 = vst.msk [vmem:[%s157_s4 + $0x4] sm:$0xf] %vm81_vm1, %v93_v37 }

// kernel: cross_encoder_forward.31
= control target key start
LH: loop header
LB: loop body
LE: loop exit
PB: predicated region body
PF: predicated region fallthrough
CT: control target
= control target key end

     0   :  { %vm19_vm0 = vcmask 785408   ;;  %v151_v0 = vmov 0.0   ;;  %vm152_vm1 = vmmov 0   ;;  %vm47_vm2 = vcmask 261120   ;;  %s195_s1 = inlined_call_operand.vmem [shape: bf16[32,96], index: 1, kind: input, shape index: {}]   ;;  %s196_s0 = inlined_call_operand.vmem [shape: bf16[16,32], index: 0, kind: input, shape index: {}]   ;;  %s197_s2 = inlined_call_operand.vmem [shape: f32[1,96], index: 2, kind: input, shape index: {}]   ;;  %s198_s3 = inlined_call_operand.vmem [shape: bf16[16,96], index: 3, kind: output, shape index: {}]  }
   0x1   :  { %138 = vmatprep.subr.bf16.mxu0 %v151_v0  ;;  %v148_v1 = vld [vmem:[%s195_s1 + $0x8] sm:$0xff]   ;;  %142 = vmatprep.mubr.msk.bf16.mxu0 %vm152_vm1, %v151_v0  ;;  %20 = vst.msk [vmem:[#allocation2] sm:$0xff] %vm19_vm0, %v151_v0  ;;  %21 = vst.msk [vmem:[#allocation2 + $0x8] sm:$0xff] %vm19_vm0, %v151_v0  ;;  %v149_v2 = vld [vmem:[%s195_s1] sm:$0xff]   ;;  %vm119_vm3 = vcmask 781312  }
   0x2   :  { %139 = vmatpush3.bf16.msra.mxu0 %v148_v1  ;;  %v150_v3 = vld [vmem:[%s196_s0] sm:$0xff]  }
   0x3   :  { %140 = vmatprep.subr.bf16.mxu0 %v151_v0  ;;  %v130_v12 = vld [vmem:[%s197_s2] ss:$0 sm:$0xff] }
   0x6   :  { %141 = vmatpush3.bf16.msra.mxu0 %v149_v2 }
   0x8   :  { %v22_v4 = vld [vmem:[#allocation2] sm:$0xff]  ;;  %v23_v8 = vld [vmem:[#allocation2 + $0x8] sm:$0xff] }
   0x9   :  { %143 = vmatmul.mubr.msk.bf16.vlgmr.msra.gmra.mxu0 %vm47_vm2, %v150_v3 }
  0xc9   :  { %v85_v5 = vpop.f32.mrf.mxu0 }
  0xca   :  { %v92_v6 = vadd.f32 %v85_v5, %v22_v4 }
  0xcb   :  { %v144_v7 = vpop.f32.mrf.mxu0 }
  0xcc   :  { %95 = vst.msk [vmem:[#allocation2] sm:$0xff] %vm19_vm0, %v92_v6 }
  0xcd   :  { %v88_v9 = vpop.f32.mrf.mxu0 }
  0xce   :  { %v93_v10 = vadd.f32 %v88_v9, %v23_v8 }
  0xcf   :  { %v145_v11 = vpop.f32.mrf.mxu0 }
  0xd0   :  { %96 = vst.msk [vmem:[#allocation2 + $0x8] sm:$0xff] %vm19_vm0, %v93_v10 }
  0xd3   :  { %v100_v13 = vld [vmem:[#allocation2] sm:$0xff] }
  0xd4   :  { %v109_v14 = vadd.f32 %v130_v12, %v100_v13 }
  0xd6   :  { %v133_v15 = vpack.c.bf16 %v109_v14, %v109_v14 }
  0xd7   :  { %v101_v16 = vld [vmem:[#allocation2 + $0x8] sm:$0xff] }
  0xd8   :  { %120 = vst.msk [vmem:[%s198_s3] sm:$0xf] %vm119_vm3, %v133_v15  ;;  %v110_v17 = vadd.f32 %v130_v12, %v101_v16 }
  0xda   :  { %v134_v18 = vpack.c.bf16 %v110_v17, %v110_v17 }
  0xdc   :  { %121 = vst.msk [vmem:[%s198_s3 + $0x4] sm:$0xf] %vm119_vm3, %v134_v18 }

// kernel: cross_encoder_forward.32
= control target key start
LH: loop header
LB: loop body
LE: loop exit
PB: predicated region body
PF: predicated region fallthrough
CT: control target
= control target key end

     0   :  { %s809_s15 = smov 0   ;;  %s811_s16 = smov 0   ;;  %s886_s0 = inlined_call_operand.vmem [shape: bf16[2,4,8,8], index: 0, kind: input, shape index: {}]   ;;  %s887_s1 = inlined_call_operand.vmem [shape: bf16[2,4,8,8], index: 1, kind: input, shape index: {}]   ;;  %s888_s2 = inlined_call_operand.vmem [shape: bf16[2,4,8,8], index: 2, kind: input, shape index: {}]   ;;  %s889_s3 = inlined_call_operand.vmem [shape: f32[2,1,8], index: 3, kind: input, shape index: {}]   ;;  %s890_s4 = inlined_call_operand.vmem [shape: bf16[2,4,8,8], index: 4, kind: output, shape index: {}]  }
   0x1   :  { %s813_s17 = smov 0   ;;  %s815_s18 = smov 0  }
   0x2   :  { %s817_s19 = smov 0  }
   0x3 LB: > { %s29_s20 = sadd.s32 1, %s770_s17  ;;  %s33_s21 = sadd.s32 1, %s774_s18  ;;  %s778_s19 = sphi %s817_s19, %s14_s19   ;;  %s774_s18 = sphi %s815_s18, %s894_s18   ;;  %s770_s17 = sphi %s813_s17, %s893_s17   ;;  %s766_s16 = sphi %s811_s16, %s892_s16   ;;  %s762_s15 = sphi %s809_s15, %s891_s15  }
   0x4   : > { %p31_p0 = scmp.ge.s32.totalorder %s29_s20, 4  ;;  %p658_p1 = scmp.ge.s32.totalorder %s778_s19, 1 }
   0x5   : > { %p241_p2 = scmp.lt.s32.totalorder %s778_s19, 9 }
   0x6   : > { %s896_s20 = smov (%p31_p0, %s29_s20), 0  ;;  %s898_s21 = smov (!%p31_p0, %s33_s21), %s774_s18 }
   0x7   : > { %p242_p3 = pnand %p658_p1, %p241_p2  ;;  %p35_p4 = scmp.ge.s32.totalorder %s898_s21, 2 }
   0x8   : > { %p301_p5 = scmp.lt.s32.totalorder (!%p242_p3), %s766_s16, 1  ;;  %p303_p6 = scmp.lt.s32.totalorder (!%p242_p3), %s762_s15, 3 }
   0x9   : > { %s900_s21 = smov (%p35_p4, %s898_s21), 0  ;;  %245 = sbr.rel (%p242_p3) target bundleno = 802 (0x322), region = 36 }
   0xe   : > { %vm353_vm0 = vcmask 64512   ;;  %v780_v0 = vmov 0.0   ;;  %vm781_vm1 = vmmov 0   ;;  %s902_s16 = smov (!%p301_p5, %s766_s16), 1  ;;  %s904_s15 = smov (!%p303_p6, %s762_s15), 3  ;;  %vm350_vm2 = vcmask 7168  }
   0xf   : > { %676 = vmatprep.subr.bf16.mxu0 %v780_v0  ;;  %354 = vst.msk [vmem:[#allocation4] sm:$0xff] %vm353_vm0, %v780_v0  ;;  %678 = vmatprep.mubr.msk.bf16.mxu0 %vm781_vm1, %v780_v0  ;;  %s659_s22 = sshll.u32 %s902_s16, 2  ;;  %v782_v4 = vmov -inf   ;;  %s336_s7 = scalar_lea.vmem %s889_s3, %s902_s16  ;;  %v783_v13 = vmov 0   ;;  %vm449_vm3 = vcmask 1043456   ;;  %vm509_vm4 = vcmask 60416  }
  0x10   : > { %682 = vmatprep.subr.bf16.mxu1 %v780_v0  ;;  %684 = vmatprep.mubr.msk.bf16.mxu1 %vm781_vm1, %v780_v0  ;;  %s306_s23 = sadd.s32 %s659_s22, %s904_s15  ;;  %351 = vst.msk [vmem:[#allocation2] sm:$0xff] %vm350_vm2, %v782_v4  ;;  %352 = vst.msk [vmem:[#allocation3] sm:$0xff] %vm350_vm2, %v780_v0  ;;  %v668_v6 = vld [vmem:[%s336_s7] ss:$0 sm:$0xff] }
  0x11   : > { %s840_s24 = sshll.u32 %s306_s23, 2  ;;  %732 = vset.pattern.permute.xlu0 %v783_v13  ;;  %733 = vset.pattern.permute.xlu1 %v783_v13 }
  0x12   : > { %s319_s27 = scalar_lea.vmem %s887_s1, %s840_s24  ;;  %s308_s30 = scalar_lea.vmem %s886_s0, %s840_s24 }
  0x13   : > { %v356_v1 = vld [vmem:[%s319_s27] sm:$0xf]  ;;  %s330_s10 = scalar_lea.vmem %s888_s2, %s840_s24  ;;  %s344_s13 = scalar_lea.vmem %s890_s4, %s840_s24 }
  0x14   : > { %v363_v2 = vsel %vm353_vm0, %v356_v1, 0  ;;  %v355_v3 = vld [vmem:[%s308_s30] sm:$0xf] }
  0x15   : > { %677 = vmatpush3.bf16.xpose.msra.mxu0 %v363_v2  ;;  %v357_v18 = vld [vmem:[%s330_s10] sm:$0xf] }
  0x16   : > { %v451_v19 = vsel %vm449_vm3, %v357_v18, 0  ;;  %v438_v38 = vld [vmem:[#allocation4] sm:$0xff] }
  0x17   : > { %v414_v14 = vld [vmem:[#allocation2] sm:$0xff]  ;;  %683 = vmatpush3.bf16.msra.mxu1 %v451_v19  ;;  %v430_v28 = vld [vmem:[#allocation3] sm:$0xff] }
  0x1c   : > { %679 = vmatmul.mubr.msk.bf16.vlgmr.msra.gmra.mxu0 %vm353_vm0, %v355_v3 }
  0xdc   : > { %v399_v5 = vpop.f32.mrf.mxu0 }
  0xdd   : > { %v405_v7 = vmul.f32 0.35355338, %v399_v5 }
  0xde   : > { %v680_v8 = vpop.f32.mrf.mxu0 }
  0xdf   : > { %v413_v9 = vadd.f32 %v668_v6, %v405_v7 }
  0xe0   : > { %v402_v10 = vpop.f32.mrf.mxu0 }
  0xe1   : > { %v415_v11 = vsel %vm353_vm0, %v413_v9, -inf }
  0xe2   : > { %416 = vmax.xlane.f32.xlu0 %v415_v11  ;;  %v681_v12 = vpop.f32.mrf.mxu0 }
 0x16b   : > { %v417_v15 = vpop.xlane.xlu0 %416 }
 0x16c   : > { %v418_v16 = vmax.f32 %v414_v14, %v417_v15 }
 0x16e   : > { %v419_v17 = vsub.f32 %v414_v14, %v418_v16  ;;  %495 = vst.msk [vmem:[#allocation2] sm:$0xff] %vm350_vm2, %v418_v16  ;;  %424 = vperm.xlu0 %732, %v418_v16  }
 0x170   : > { %v420_v26 = vmul.f32 1.442695, %v419_v17 }
 0x1e9   : > { %v425_v20 = vpop.permute.xlu0 %424 }
 0x1ea   : > { %v427_v21 = vsub.f32 %v413_v9, %v425_v20 }
 0x1ec   : > { %v428_v22 = vmul.f32 1.442695, %v427_v21 }
 0x1ee   : > { %734 = vpow2.f32 %v428_v22 }
 0x1ef   : > { %736 = vpow2.f32 %v420_v26 }
 0x1fb   : > { %v735_v23 = vpop.eup %734 }
 0x1fc   : > { %v432_v24 = vsel %vm353_vm0, %v735_v23, 0.0  ;;  %v445_v25 = vpack.c.bf16 %v735_v23, %v735_v23  ;;  %v737_v27 = vpop.eup %736 }
 0x1fd   : > { %433 = vadd.xlane.f32.xlu1 %v432_v24  ;;  %v431_v29 = vmul.f32 %v737_v27, %v430_v28 }
 0x1fe   : > { %685 = vmatmul.mubr.msk.bf16.vlgmr.msra.gmra.mxu1 %vm353_vm0, %v445_v25 }
 0x286   : > { %v434_v30 = vpop.xlane.xlu1 %433 }
 0x287   : > { %v435_v31 = vadd.f32 %v434_v30, %v431_v29 }
 0x289   : > { %437 = vst.msk [vmem:[#allocation3] sm:$0xff] %vm350_vm2, %v435_v31 }
 0x290   : > { %v500_v32 = vld [vmem:[#allocation3] sm:$0xff] }
 0x291   : > { %503 = vperm.xlu1 %733, %v500_v32  }
 0x295   : > { %441 = vperm.xlu1 %733, %v737_v27  }
 0x2be   : > { %v487_v33 = vpop.f32.mrf.mxu1 }
 0x2c0   : > { %v686_v34 = vpop.f32.mrf.mxu1 }
 0x2c2   : > { %v490_v35 = vpop.f32.mrf.mxu1 }
 0x2c4   : > { %v687_v36 = vpop.f32.mrf.mxu1 }
 0x30c   : > { %v504_v37 = vpop.permute.xlu1 %503 }
 0x30d   : > { %738 = vrcp.f32 %v504_v37 }
 0x310   : > { %v442_v39 = vpop.permute.xlu1 %441 }
 0x311   : > { %v444_v40 = vmul.f32 %v442_v39, %v438_v38 }
 0x313   : > { %v493_v41 = vadd.f32 %v487_v33, %v444_v40 }
 0x315   : > { %494 = vst.msk [vmem:[#allocation4] sm:$0xff] %vm353_vm0, %v493_v41 }
 0x31a   : > { %v739_v42 = vpop.eup %738 }
 0x31c   : > { %v499_v43 = vld [vmem:[#allocation4] sm:$0xff] }
 0x31d   : > { %v507_v44 = vmul.f32 %v739_v42, %v499_v43 }
 0x31f   : > { %v508_v45 = vpack.c.bf16 %v507_v44, %v507_v44 }
 0x321   : > { %510 = vst.msk [vmem:[%s344_s13] sm:$0xf] %vm509_vm4, %v508_v45 }
 0x322 PF: > { %s14_s19 = sadd.s32 1, %s778_s19   ;;  %s891_s15 = smov %s770_s17 }
 0x323   : > { %p11_p7 = scmp.ge.s32.totalorder %s14_s19, 10   ;;  %s892_s16 = smov %s774_s18 }
 0x324   : > { %s893_s17 = smov %s896_s20  ;;  %s894_s18 = smov %s900_s21 }
 0x325   :  { %13 = sbr.rel (!%p11_p7) target bundleno = 3 (0x3), region = 83 }

// kernel: cross_encoder_forward.33
= control target key start
LH: loop header
LB: loop body
LE: loop exit
PB: predicated region body
PF: predicated region fallthrough
CT: control target
= control target key end

     0   :  { %vm19_vm0 = vcmask 261120   ;;  %v150_v0 = vmov 0.0   ;;  %vm151_vm1 = vmmov 0   ;;  %vm118_vm2 = vcmask 257024   ;;  %s195_s1 = inlined_call_operand.vmem [shape: bf16[32,32], index: 1, kind: input, shape index: {}]   ;;  %s196_s0 = inlined_call_operand.vmem [shape: bf16[16,32], index: 0, kind: input, shape index: {}]   ;;  %s197_s2 = inlined_call_operand.vmem [shape: f32[1,32], index: 2, kind: input, shape index: {}]   ;;  %s198_s3 = inlined_call_operand.vmem [shape: bf16[16,32], index: 3, kind: output, shape index: {}]  }
   0x1   :  { %137 = vmatprep.subr.bf16.mxu0 %v150_v0  ;;  %v147_v1 = vld [vmem:[%s195_s1 + $0x8] sm:$0xff]   ;;  %141 = vmatprep.mubr.msk.bf16.mxu0 %vm151_vm1, %v150_v0  ;;  %20 = vst.msk [vmem:[#allocation2] sm:$0xff] %vm19_vm0, %v150_v0  ;;  %21 = vst.msk [vmem:[#allocation2 + $0x8] sm:$0xff] %vm19_vm0, %v150_v0  ;;  %v148_v2 = vld [vmem:[%s195_s1] sm:$0xff]  }
   0x2   :  { %138 = vmatpush3.bf16.msra.mxu0 %v147_v1  ;;  %v149_v3 = vld [vmem:[%s196_s0] sm:$0xff]  }
   0x3   :  { %139 = vmatprep.subr.bf16.mxu0 %v150_v0  ;;  %v129_v12 = vld [vmem:[%s197_s2] ss:$0 sm:$0xff] }
   0x6   :  { %140 = vmatpush3.bf16.msra.mxu0 %v148_v2 }
   0x8   :  { %v22_v4 = vld [vmem:[#allocation2] sm:$0xff]  ;;  %v23_v8 = vld [vmem:[#allocation2 + $0x8] sm:$0xff] }
   0x9   :  { %142 = vmatmul.mubr.msk.bf16.vlgmr.msra.gmra.mxu0 %vm19_vm0, %v149_v3 }
  0xc9   :  { %v85_v5 = vpop.f32.mrf.mxu0 }
  0xca   :  { %v92_v6 = vadd.f32 %v85_v5, %v22_v4 }
  0xcb   :  { %v143_v7 = vpop.f32.mrf.mxu0 }
  0xcc   :  { %94 = vst.msk [vmem:[#allocation2] sm:$0xff] %vm19_vm0, %v92_v6 }
  0xcd   :  { %v88_v9 = vpop.f32.mrf.mxu0 }
  0xce   :  { %v93_v10 = vadd.f32 %v88_v9, %v23_v8 }
  0xcf   :  { %v144_v11 = vpop.f32.mrf.mxu0 }
  0xd0   :  { %95 = vst.msk [vmem:[#allocation2 + $0x8] sm:$0xff] %vm19_vm0, %v93_v10 }
  0xd3   :  { %v99_v13 = vld [vmem:[#allocation2] sm:$0xff] }
  0xd4   :  { %v108_v14 = vadd.f32 %v129_v12, %v99_v13 }
  0xd6   :  { %v132_v15 = vpack.c.bf16 %v108_v14, %v108_v14 }
  0xd7   :  { %v100_v16 = vld [vmem:[#allocation2 + $0x8] sm:$0xff] }
  0xd8   :  { %119 = vst.msk [vmem:[%s198_s3] sm:$0xf] %vm118_vm2, %v132_v15  ;;  %v109_v17 = vadd.f32 %v129_v12, %v100_v16 }
  0xda   :  { %v133_v18 = vpack.c.bf16 %v109_v17, %v109_v17 }
  0xdc   :  { %120 = vst.msk [vmem:[%s198_s3 + $0x4] sm:$0xf] %vm118_vm2, %v133_v18 }

// kernel: cross_encoder_forward.35
= control target key start
LH: loop header
LB: loop body
LE: loop exit
PB: predicated region body
PF: predicated region fallthrough
CT: control target
= control target key end

     0   :  { %vm19_vm0 = vcmask 523264   ;;  %v173_v0 = vmov 0.0   ;;  %vm174_vm1 = vmmov 0   ;;  %vm47_vm2 = vcmask 261120   ;;  %s217_s1 = inlined_call_operand.vmem [shape: bf16[32,64], index: 1, kind: input, shape index: {}]   ;;  %s218_s0 = inlined_call_operand.vmem [shape: bf16[16,32], index: 0, kind: input, shape index: {}]   ;;  %s219_s2 = inlined_call_operand.vmem [shape: f32[1,64], index: 2, kind: input, shape index: {}]   ;;  %s220_s3 = inlined_call_operand.vmem [shape: bf16[16,64], index: 3, kind: output, shape index: {}]  }
   0x1   :  { %156 = vmatprep.subr.bf16.mxu0 %v173_v0  ;;  %v166_v1 = vld [vmem:[%s217_s1 + $0x8] sm:$0xff]   ;;  %160 = vmatprep.mubr.msk.bf16.mxu0 %vm174_vm1, %v173_v0  ;;  %20 = vst.msk [vmem:[#allocation2] sm:$0xff] %vm19_vm0, %v173_v0  ;;  %21 = vst.msk [vmem:[#allocation2 + $0x8] sm:$0xff] %vm19_vm0, %v173_v0  ;;  %v167_v2 = vld [vmem:[%s217_s1] sm:$0xff]   ;;  %vm137_vm3 = vcmask 519168  }
   0x2   :  { %157 = vmatpush3.bf16.msra.mxu0 %v166_v1  ;;  %v168_v3 = vld [vmem:[%s218_s0] sm:$0xff]  }
   0x3   :  { %158 = vmatprep.subr.bf16.mxu0 %v173_v0  ;;  %v148_v12 = vld [vmem:[%s219_s2] ss:$0 sm:$0xff] }
   0x6   :  { %159 = vmatpush3.bf16.msra.mxu0 %v167_v2 }
   0x8   :  { %v22_v4 = vld [vmem:[#allocation2] sm:$0xff]  ;;  %v23_v8 = vld [vmem:[#allocation2 + $0x8] sm:$0xff] }
   0x9   :  { %161 = vmatmul.mubr.msk.bf16.vlgmr.msra.gmra.mxu0 %vm47_vm2, %v168_v3 }
  0xc9   :  { %v85_v5 = vpop.f32.mrf.mxu0 }
  0xca   :  { %v92_v6 = vadd.f32 %v85_v5, %v22_v4 }
  0xcb   :  { %v162_v7 = vpop.f32.mrf.mxu0 }
  0xcc   :  { %95 = vst.msk [vmem:[#allocation2] sm:$0xff] %vm19_vm0, %v92_v6 }
  0xcd   :  { %v88_v9 = vpop.f32.mrf.mxu0 }
  0xce   :  { %v93_v10 = vadd.f32 %v88_v9, %v23_v8 }
  0xcf   :  { %v163_v11 = vpop.f32.mrf.mxu0 }
  0xd0   :  { %96 = vst.msk [vmem:[#allocation2 + $0x8] sm:$0xff] %vm19_vm0, %v93_v10 }
  0xd3   :  { %v100_v13 = vld [vmem:[#allocation2] sm:$0xff] }
  0xd4   :  { %v109_v14 = vadd.f32 %v148_v12, %v100_v13 }
  0xd6   :  { %v111_v15 = vmul.f32 %v109_v14, %v109_v14 }
  0xd7   :  { %v101_v16 = vld [vmem:[#allocation2 + $0x8] sm:$0xff] }
  0xd8   :  { %v113_v17 = vmul.f32 %v111_v15, %v109_v14  ;;  %v110_v18 = vadd.f32 %v148_v12, %v101_v16 }
  0xda   :  { %v115_v19 = vmul.f32 0.044715, %v113_v17  ;;  %v112_v20 = vmul.f32 %v110_v18, %v110_v18 }
  0xdc   :  { %v117_v21 = vadd.f32 %v115_v19, %v109_v14  ;;  %v114_v22 = vmul.f32 %v112_v20, %v110_v18 }
  0xde   :  { %v119_v23 = vmul.f32 0.7978846, %v117_v21  ;;  %v116_v24 = vmul.f32 0.044715, %v114_v22 }
  0xe0   :  { %169 = vtanh.f32 %v119_v23  ;;  %v118_v25 = vadd.f32 %v116_v24, %v110_v18 }
  0xe2   :  { %v120_v26 = vmul.f32 0.7978846, %v118_v25 }
  0xe4   :  { %171 = vtanh.f32 %v120_v26 }
  0xed   :  { %v170_v27 = vpop.eup %169 }
  0xee   :  { %v123_v28 = vadd.f32 1.0, %v170_v27 }
  0xf0   :  { %v125_v29 = vmul.f32 0.5, %v123_v28 }
  0xf1   :  { %v172_v30 = vpop.eup %171 }
  0xf2   :  { %v127_v31 = vmul.f32 %v125_v29, %v109_v14  ;;  %v124_v32 = vadd.f32 1.0, %v172_v30 }
  0xf4   :  { %v151_v33 = vpack.c.bf16 %v127_v31, %v127_v31  ;;  %v126_v34 = vmul.f32 0.5, %v124_v32 }
  0xf6   :  { %138 = vst.msk [vmem:[%s220_s3] sm:$0xf] %vm137_vm3, %v151_v33  ;;  %v128_v35 = vmul.f32 %v126_v34, %v110_v18 }
  0xf8   :  { %v152_v36 = vpack.c.bf16 %v128_v35, %v128_v35 }
  0xfa   :  { %139 = vst.msk [vmem:[%s220_s3 + $0x4] sm:$0xf] %vm137_vm3, %v152_v36 }

// kernel: cross_encoder_forward.59
= control target key start
LH: loop header
LB: loop body
LE: loop exit
PB: predicated region body
PF: predicated region fallthrough
CT: control target
= control target key end

     0   :  { %s1065_s15 = smov 0   ;;  %s1142_s0 = inlined_call_operand.vmem [shape: bf16[2,8,32], index: 0, kind: input, shape index: {}]   ;;  %s1143_s1 = inlined_call_operand.vmem [shape: bf16[2,8,32], index: 1, kind: input, shape index: {}]   ;;  %s1144_s2 = inlined_call_operand.vmem [shape: bf16[2,8,32], index: 2, kind: input, shape index: {}]   ;;  %s1145_s3 = inlined_call_operand.vmem [shape: bf16[2,8,32], index: 3, kind: input, shape index: {}]   ;;  %s1146_s4 = inlined_call_operand.vmem [shape: f32[2,8,1], index: 4, kind: input, shape index: {}]   ;;  %s1147_s5 = inlined_call_operand.vmem [shape: bf16[32,32], index: 5, kind: input, shape index: {}]   ;;  %s1148_s6 = inlined_call_operand.vmem [shape: f32[1,32], index: 6, kind: input, shape index: {}]   ;;  %s1149_s7 = inlined_call_operand.vmem [shape: bf16[32,1], index: 7, kind: input, shape index: {}]   ;;  %s1150_s8 = inlined_call_operand.vmem [shape: bf16[32,1], index: 8, kind: input, shape index: {}]   ;;  %s1151_s9 = inlined_call_operand.<no memory space> [shape: f32[1,1], index: 9, kind: input, shape index: {}]   ;;  %s1152_s10 = inlined_call_operand.vmem [shape: f32[2,1,1], index: 10, kind: output, shape index: {}]  }
   0x1   :  { %v15_v0 = vstv %s1151_s9 }
   0x2   :  { %16 = vst [vmem:[#allocation2] sm:$0x1] %v15_v0 }
   0x3 LB: > { %s892_s16 = sadd.s32 4294967295, %s1003_s15   ;;  %p896_p0 = scmp.ge.s32.totalorder %s1003_s15, 1  ;;  %s1003_s15 = sphi %s1065_s15, %s22_s15  }
   0x4   : > { %p349_p1 = scmp.lt.s32.totalorder %s1003_s15, 3 }
   0x6   : > { %p350_p2 = pnand %p896_p0, %p349_p1 }
   0x7   : > { %p400_p3 = scmp.lt.s32.totalorder (!%p350_p2), %s892_s16, 1 }
   0x8   : > { %353 = sbr.rel (%p350_p2) target bundleno = 1008 (0x3f0), region = 60 }
   0xd   : > { %v989_v1 = vld [vmem:[%s1147_s5 + $0x8] sm:$0xff]   ;;  %v1005_v2 = vmov 0.0   ;;  %v990_v3 = vld [vmem:[%s1147_s5] sm:$0xff]   ;;  %vm1006_vm0 = vmmov 0   ;;  %s1154_s16 = smov (!%p400_p3, %s892_s16), 1  ;;  %vm460_vm1 = vcmask 261120  }
   0xe   : > { %944 = vmatprep.subr.bf16.mxu0 %v1005_v2  ;;  %952 = vmatprep.subr.mxu1 %v1005_v2  ;;  %s897_s20 = sshll.u32 %s1154_s16, 2  ;;  %v927_v17 = vld [vmem:[%s1149_s7 + $0x8] sm:$0xff]   ;;  %v912_v18 = vld [vmem:[%s1149_s7] sm:$0xff]   ;;  %vm587_vm2 = vcmask 7168   ;;  %vm639_vm3 = vcmask 64512   ;;  %s422_s30 = scalar_lea.vmem %s1152_s10, %s1154_s16  ;;  %vm795_vm4 = vcmask 0  }
   0xf   : > { %945 = vmatpush3.bf16.msra.mxu0 %v989_v1  ;;  %948 = vmatprep.mubr.msk.bf16.mxu0 %vm1006_vm0, %v1005_v2  ;;  %s403_s23 = scalar_lea.vmem %s1142_s0, %s897_s20  ;;  %s407_s26 = scalar_lea.vmem %s1143_s1, %s897_s20  ;;  %v917_v19 = vunpack.c.l.bf16 %v927_v17  ;;  %v918_v20 = vunpack.c.h.bf16 %v927_v17  ;;  %v914_v21 = vunpack.c.h.bf16 %v912_v18  ;;  %v913_v22 = vunpack.c.l.bf16 %v912_v18  ;;  %v902_v23 = vld [vmem:[%s1148_s6] ss:$0 sm:$0xff]  ;;  %v928_v52 = vld [vmem:[%s1150_s8 + $0x8] sm:$0xff]  }
  0x10   : > { %946 = vmatprep.subr.bf16.mxu0 %v1005_v2  ;;  %960 = vmatprep.mubr.msk.f32.mxu1 %vm1006_vm0, %v1005_v2  ;;  %s411_s29 = scalar_lea.vmem %s1144_s2, %s897_s20  ;;  %s415_s12 = scalar_lea.vmem %s1145_s3, %s897_s20  ;;  %v424_v4 = vld [vmem:[%s403_s23] sm:$0xf]  ;;  %v926_v55 = vunpack.c.h.bf16 %v928_v52  ;;  %v925_v56 = vunpack.c.l.bf16 %v928_v52 }
  0x11   : > { %v426_v5 = vld [vmem:[%s407_s26] sm:$0xf]  ;;  %v425_v6 = vunpack.c.l.bf16 %v424_v4  ;;  %953 = vmatpush3.msra.mxu1 %v918_v20  ;;  %s901_s20 = sshll.u32 %s1154_s16, 3 }
  0x12   : > { %v427_v7 = vunpack.c.l.bf16 %v426_v5  ;;  %v429_v8 = vld [vmem:[%s411_s29] sm:$0xf]  ;;  %954 = vmatprep.subr.mxu1 %v1005_v2  ;;  %s419_s23 = scalar_lea.vmem %s1146_s4, %s901_s20 }
  0x13   : > { %947 = vmatpush3.bf16.msra.mxu0 %v990_v3  ;;  %v432_v9 = vld [vmem:[%s415_s12] sm:$0xf]  ;;  %v430_v10 = vunpack.c.l.bf16 %v429_v8  ;;  %955 = vmatpush3.msra.mxu1 %v917_v19 }
  0x14   : > { %968 = vmatprep.subr.mxu0 %v1005_v2  ;;  %v428_v11 = vadd.f32 %v427_v7, %v425_v6  ;;  %v433_v12 = vunpack.c.l.bf16 %v432_v9  ;;  %956 = vmatprep.subr.mxu1 %v1005_v2  ;;  %v513_v30 = vld [vmem:[%s419_s23] sm:$0xff] }
  0x15   : > { %957 = vmatpush3.msra.mxu1 %v914_v21  ;;  %v920_v53 = vld [vmem:[%s1150_s8] sm:$0xff]  }
  0x16   : > { %v431_v13 = vadd.f32 %v430_v10, %v428_v11  ;;  %958 = vmatprep.subr.mxu1 %v1005_v2  ;;  %v922_v57 = vunpack.c.h.bf16 %v920_v53  ;;  %v921_v58 = vunpack.c.l.bf16 %v920_v53  ;;  %v721_v62 = vld [vmem:[#allocation2] sm:$0x1] }
  0x17   : > { %959 = vmatpush3.msra.mxu1 %v913_v22 }
  0x18   : > { %v434_v14 = vadd.f32 %v433_v12, %v431_v13  ;;  %963 = vmatprep.subr.mxu1 %v1005_v2 }
  0x1a   : > { %v435_v15 = vmul.f32 0.25, %v434_v14 }
  0x1c   : > { %v436_v16 = vpack.c.bf16 %v435_v15, %v435_v15 }
  0x1e   : > { %949 = vmatmul.mubr.msk.bf16.vlgmr.msra.gmra.mxu0 %vm460_vm1, %v436_v16 }
  0x1f   : > { %976 = vmatprep.mubr.msk.f32.mxu0 %vm1006_vm0, %v1005_v2  ;;  %969 = vmatpush3.msra.mxu0 %v926_v55 }
  0x20   : > { %970 = vmatprep.subr.mxu0 %v1005_v2 }
  0x21   : > { %971 = vmatpush3.msra.mxu0 %v925_v56 }
  0x22   : > { %972 = vmatprep.subr.mxu0 %v1005_v2 }
  0x23   : > { %973 = vmatpush3.msra.mxu0 %v922_v57 }
  0x24   : > { %974 = vmatprep.subr.mxu0 %v1005_v2 }
  0x25   : > { %975 = vmatpush3.msra.mxu0 %v921_v58 }
  0xde   : > { %v498_v24 = vpop.f32.mrf.mxu0 }
  0xdf   : > { %v499_v25 = vadd.f32 %v902_v23, %v498_v24 }
  0xe0   : > { %v950_v26 = vpop.f32.mrf.mxu0 }
  0xe1   : > { %991 = vtanh.f32 %v499_v25 }
  0xe2   : > { %v501_v27 = vpop.f32.mrf.mxu0 }
  0xe4   : > { %v951_v28 = vpop.f32.mrf.mxu0 }
  0xee   : > { %v992_v29 = vpop.eup %991 }
  0xef   : > { %961 = vmatmul.mubr.msk.f32.vlgmr.msra.gmra.mxu1 %vm460_vm1, %v992_v29 }
  0xf0   : > { %964 = vmatpush3.msra.mxu1 %v435_v15  ;;  %965 = vmatprep.mubr.msk.f32.mxu1 %vm1006_vm0, %v1005_v2 }
 0x1af   : > { %v583_v31 = vpop.f32.mrf.mxu1 }
 0x1b0   : > { %v584_v32 = vadd.f32 %v583_v31, %v513_v30 }
 0x1b1   : > { %v962_v33 = vpop.f32.mrf.mxu1 }
 0x1b2   : > { %v588_v34 = vsel %vm587_vm2, %v584_v32, -inf }
 0x1b3   : > { %v589_v35 = vrot.slane %v588_v34, 4 }
 0x1b5   : > { %v590_v36 = vmax.f32 %v588_v34, %v589_v35 }
 0x1b7   : > { %v591_v37 = vrot.slane %v590_v36, 2 }
 0x1b9   : > { %v592_v38 = vmax.f32 %v590_v36, %v591_v37 }
 0x1bb   : > { %v593_v39 = vrot.slane %v592_v38, 1 }
 0x1bd   : > { %v594_v40 = vmax.f32 %v592_v38, %v593_v39 }
 0x1bf   : > { %v595_v41 = vsub.f32 %v584_v32, %v594_v40 }
 0x1c1   : > { %v596_v42 = vmul.f32 1.442695, %v595_v41 }
 0x1c3   : > { %993 = vpow2.f32 %v596_v42 }
 0x1d0   : > { %v994_v43 = vpop.eup %993 }
 0x1d1   : > { %v598_v44 = vsel %vm587_vm2, %v994_v43, 0.0 }
 0x1d2   : > { %v599_v45 = vrot.slane %v598_v44, 4 }
 0x1d4   : > { %v600_v46 = vadd.f32 %v599_v45, %v598_v44 }
 0x1d6   : > { %v601_v47 = vrot.slane %v600_v46, 2 }
 0x1d8   : > { %v602_v48 = vadd.f32 %v601_v47, %v600_v46 }
 0x1da   : > { %v603_v49 = vrot.slane %v602_v48, 1 }
 0x1dc   : > { %v604_v50 = vadd.f32 %v603_v49, %v602_v48 }
 0x1de   : > { %995 = vrcp.f32 %v604_v50 }
 0x1eb   : > { %v996_v51 = vpop.eup %995 }
 0x1ec   : > { %v606_v54 = vmul.f32 %v996_v51, %v994_v43 }
 0x1ee   : > { %607 = vxpose.xlu0.b32.start.end [1/1] (short) (narrow) %v606_v54, 8 }
 0x26a   : > { %v623_v59 = vpop.trf.xlu0 }
 0x26b   : > { %966 = vmatmul.mubr.msk.f32.vlgmr.msra.gmra.mxu1 %vm639_vm3, %v623_v59 }
 0x32b   : > { %v709_v60 = vpop.f32.mrf.mxu1 }
 0x32c   : > { %977 = vmatmul.mubr.msk.f32.vlgmr.msra.gmra.mxu0 %vm460_vm1, %v709_v60 }
 0x32d   : > { %v967_v61 = vpop.f32.mrf.mxu1 }
 0x3ec   : > { %v791_v63 = vpop.f32.mrf.mxu0 }
 0x3ed   : > { %v792_v0 = vadd.f32 %v791_v63, %v721_v62 }
 0x3ee   : > { %v978_v1 = vpop.f32.mrf.mxu0 }
 0x3ef   : > { %796 = vst.msk [vmem:[%s422_s30] sm:$0x1] %vm795_vm4, %v792_v0 }
 0x3f0 PF: > { %s22_s15 = sadd.s32 1, %s1003_s15  }
 0x3f1   : > { %p19_p4 = scmp.ge.s32.totalorder %s22_s15, 4  }
 0x3f3   :  { %21 = sbr.rel (!%p19_p4) target bundleno = 3 (0x3), region = 102 }

// kernel: cross_encoder_forward.36
= control target key start
LH: loop header
LB: loop body
LE: loop exit
PB: predicated region body
PF: predicated region fallthrough
CT: control target
= control target key end

     0   :  { %vm19_vm0 = vcmask 261120   ;;  %v177_v0 = vmov 0.0   ;;  %vm178_vm1 = vmmov 0   ;;  %vm63_vm2 = vcmask 523264   ;;  %s227_s1 = inlined_call_operand.vmem [shape: bf16[64,32], index: 1, kind: input, shape index: {}]   ;;  %s228_s0 = inlined_call_operand.vmem [shape: bf16[16,64], index: 0, kind: input, shape index: {}]   ;;  %s229_s2 = inlined_call_operand.vmem [shape: f32[1,32], index: 2, kind: input, shape index: {}]   ;;  %s230_s3 = inlined_call_operand.vmem [shape: bf16[16,32], index: 3, kind: output, shape index: {}]  }
   0x1   :  { %158 = vmatprep.subr.bf16.mxu0 %v177_v0  ;;  %v172_v1 = vld [vmem:[%s227_s1 + $0x18] sm:$0xff]   ;;  %166 = vmatprep.mubr.msk.bf16.mxu0 %vm178_vm1, %v177_v0  ;;  %20 = vst.msk [vmem:[#allocation2] sm:$0xff] %vm19_vm0, %v177_v0  ;;  %21 = vst.msk [vmem:[#allocation2 + $0x8] sm:$0xff] %vm19_vm0, %v177_v0  ;;  %v173_v2 = vld [vmem:[%s227_s1 + $0x10] sm:$0xff]   ;;  %vm135_vm3 = vcmask 257024  }
   0x2   :  { %159 = vmatpush3.bf16.msra.mxu0 %v172_v1  ;;  %v174_v3 = vld [vmem:[%s227_s1 + $0x8] sm:$0xff]   ;;  %v175_v4 = vld [vmem:[%s227_s1] sm:$0xff]  }
   0x3   :  { %160 = vmatprep.subr.bf16.mxu0 %v177_v0  ;;  %v176_v5 = vld [vmem:[%s228_s0] sm:$0xff]  }
   0x4   :  { %v148_v14 = vld [vmem:[%s229_s2] ss:$0 sm:$0xff] }
   0x6   :  { %161 = vmatpush3.bf16.msra.mxu0 %v173_v2 }
   0x7   :  { %162 = vmatprep.subr.bf16.mxu0 %v177_v0 }
   0x8   :  { %v22_v6 = vld [vmem:[#allocation2] sm:$0xff]  ;;  %v23_v10 = vld [vmem:[#allocation2 + $0x8] sm:$0xff] }
   0xa   :  { %163 = vmatpush3.bf16.msra.mxu0 %v174_v3 }
   0xb   :  { %164 = vmatprep.subr.bf16.mxu0 %v177_v0 }
   0xe   :  { %165 = vmatpush3.bf16.msra.mxu0 %v175_v4 }
  0x11   :  { %167 = vmatmul.mubr.msk.bf16.vlgmr.msra.gmra.mxu0 %vm63_vm2, %v176_v5 }
  0xd1   :  { %v101_v7 = vpop.f32.mrf.mxu0 }
  0xd2   :  { %v108_v8 = vadd.f32 %v101_v7, %v22_v6 }
  0xd3   :  { %v168_v9 = vpop.f32.mrf.mxu0 }
  0xd4   :  { %111 = vst.msk [vmem:[#allocation2] sm:$0xff] %vm19_vm0, %v108_v8 }
  0xd5   :  { %v104_v11 = vpop.f32.mrf.mxu0 }
  0xd6   :  { %v109_v12 = vadd.f32 %v104_v11, %v23_v10 }
  0xd7   :  { %v169_v13 = vpop.f32.mrf.mxu0 }
  0xd8   :  { %112 = vst.msk [vmem:[#allocation2 + $0x8] sm:$0xff] %vm19_vm0, %v109_v12 }
  0xdb   :  { %v116_v15 = vld [vmem:[#allocation2] sm:$0xff] }
  0xdc   :  { %v125_v16 = vadd.f32 %v148_v14, %v116_v15 }
  0xde   :  { %v151_v17 = vpack.c.bf16 %v125_v16, %v125_v16 }
  0xdf   :  { %v117_v18 = vld [vmem:[#allocation2 + $0x8] sm:$0xff] }
  0xe0   :  { %136 = vst.msk [vmem:[%s230_s3] sm:$0xf] %vm135_vm3, %v151_v17  ;;  %v126_v19 = vadd.f32 %v148_v14, %v117_v18 }
  0xe2   :  { %v152_v20 = vpack.c.bf16 %v126_v19, %v126_v19 }
  0xe4   :  { %137 = vst.msk [vmem:[%s230_s3 + $0x4] sm:$0xf] %vm135_vm3, %v152_v20 }

</bundles_post_ra>
